<compile_context>
chip_gen: v7x
topology: tpu7x:2x2x1
jax: 0.10.0
libtpu: 0.0.40
codegen_flags: <defaults>
</compile_context>

<pallas_src>
import functools

import jax
import jax.numpy as jnp
from jax.experimental import pallas as pl
from jax.experimental.pallas import tpu as pltpu


def _linear_attention_kernel(x_ref, wqkv_ref, wout_ref, bout_ref, mask_ref,
                             o_ref, *, hidden, internal_matmul_dtype):
    """One grid step == one batch element.

    x_ref    : (1, N, Cp)        VMEM  (matmul dtype)
    wqkv_ref : (Cp, 3*hidden)    VMEM  (matmul dtype)
    wout_ref : (hidden, Cp)      VMEM  (matmul dtype, q-scale pre-folded)
    bout_ref : (1, Cp)           VMEM  f32
    mask_ref : (hidden, hidden)  VMEM  f32 block-diagonal head mask
    o_ref    : (1, N, Cp)        VMEM
    """
    mdt = internal_matmul_dtype
    x = x_ref[0]                                            # (N, Cp)

    # qkv projection — one full-width MXU matmul, f32 accumulation.
    qkv = jnp.dot(x, wqkv_ref[...], preferred_element_type=jnp.float32)
    q = qkv[:, 0 * hidden:1 * hidden]                       # (N, hidden) f32
    k = qkv[:, 1 * hidden:2 * hidden]
    v = qkv[:, 2 * hidden:3 * hidden]

    mask = mask_ref[...]                                    # (hidden, hidden) f32

    # ---- q: softmax over the per-head feature dim (dim=-2 of 'b h d n') ----
    # Subtracting the *row* max is exact (softmax is shift-invariant per head)
    # and keeps everything 128 lanes wide — no per-head 32-lane slicing.
    q = q - jnp.max(q, axis=1, keepdims=True)
    exp_q = jnp.exp(q)                                      # (N, hidden) f32
    # Per-head (segmented) sums, broadcast back to (N, hidden), via the MXU.
    qsum = jnp.dot(exp_q, mask, preferred_element_type=jnp.float32)

    # ---- k: softmax over the sequence dim (dim=-1 of 'b h d n') ----
    # Column-wise over N; no head segmentation needed.
    k = k - jnp.max(k, axis=0, keepdims=True)
    exp_k = jnp.exp(k)
    ksum = jnp.sum(exp_k, axis=0, keepdims=True)            # (1, hidden)
    k_soft = exp_k * pl.reciprocal(ksum, approx=True)       # (N, hidden)

    # ---- ctx[d, e] = sum_n k_soft[n, d] v[n, e], block-diagonal masked ----
    ctx = jnp.dot(k_soft.astype(mdt).T, v.astype(mdt),
                  preferred_element_type=jnp.float32)       # (hidden, hidden)
    ctx = (ctx * mask).astype(mdt)                          # zero off-head blocks

    # ---- O = softmax_d(q) @ ctx  (q-normalization applied after the matmul;
    #      the attention scale is folded into w_out host-side) ----
    o_raw = jnp.dot(exp_q.astype(mdt), ctx, preferred_element_type=jnp.float32)
    out_flat = o_raw * pl.reciprocal(qsum, approx=True)     # (N, hidden), head-major

    # ---- to_out projection (+ bias) ----
    y = jnp.dot(out_flat.astype(wout_ref.dtype), wout_ref[...],
                preferred_element_type=jnp.float32)
    y = y + bout_ref[...]                                   # broadcast (1, Cp)
    o_ref[0] = y.astype(o_ref.dtype)


def linear_attention(x, w_qkv, w_out, b_out, *, heads, dim_head,
                     matmul_dtype=None):
    """x: (B, N, C). Returns (B, N, C) in x.dtype.

    matmul_dtype: dtype for MXU operands (e.g. jnp.bfloat16 for the fast path);
    accumulation and softmax math are always f32.
    """
    B, N, C = x.shape
    hidden = heads * dim_head
    assert w_qkv.shape == (C, 3 * hidden)
    assert w_out.shape == (hidden, C)
    assert b_out.shape == (C,)
    out_dtype = x.dtype
    if matmul_dtype is None:
        matmul_dtype = x.dtype
    scale = dim_head ** (-0.5)

    # Fold the q scale into the output projection (removes per-element muls).
    w_out_scaled = w_out.astype(jnp.float32) * scale

    # Pad channels to a multiple of 128 so loads/stores are lane-dense.
    # Zero-padded rows/cols keep the math exactly identical; slice afterwards.
    C_pad = ((C + 127) // 128) * 128
    pad_c = C_pad - C
    if pad_c:
        x_p = jnp.pad(x, ((0, 0), (0, 0), (0, pad_c)))
        w_qkv_p = jnp.pad(w_qkv, ((0, pad_c), (0, 0)))
        w_out_p = jnp.pad(w_out_scaled, ((0, 0), (0, pad_c)))
        b_out_p = jnp.pad(b_out, (0, pad_c))
    else:
        x_p, w_qkv_p, w_out_p, b_out_p = x, w_qkv, w_out_scaled, b_out

    x_p = x_p.astype(matmul_dtype)
    w_qkv_p = w_qkv_p.astype(matmul_dtype)
    w_out_p = w_out_p.astype(matmul_dtype)
    b_out_p = b_out_p.astype(jnp.float32).reshape(1, C_pad)

    # Block-diagonal head mask (built once, host-side); also serves as the
    # segmented-sum matrix for the per-head q-softmax denominators.
    head_id = jnp.arange(hidden) // dim_head
    mask = (head_id[:, None] == head_id[None, :]).astype(jnp.float32)

    kernel = functools.partial(
        _linear_attention_kernel,
        hidden=hidden,
        internal_matmul_dtype=matmul_dtype,
    )

    out = pl.pallas_call(
        kernel,
        out_shape=jax.ShapeDtypeStruct((B, N, C_pad), out_dtype),
        grid_spec=pltpu.PrefetchScalarGridSpec(
            num_scalar_prefetch=0,
            grid=(B,),
            in_specs=[
                pl.BlockSpec((1, N, C_pad), lambda b: (b, 0, 0)),
                pl.BlockSpec((C_pad, 3 * hidden), lambda b: (0, 0)),
                pl.BlockSpec((hidden, C_pad), lambda b: (0, 0)),
                pl.BlockSpec((1, C_pad), lambda b: (0, 0)),
                pl.BlockSpec((hidden, hidden), lambda b: (0, 0)),
            ],
            out_specs=pl.BlockSpec((1, N, C_pad), lambda b: (b, 0, 0)),
        ),
        compiler_params=pltpu.CompilerParams(
            dimension_semantics=("parallel",),
            vmem_limit_bytes=48 * 1024 * 1024,
        ),
    )(x_p, w_qkv_p, w_out_p, b_out_p, mask)

    return out[..., :C] if pad_c else out


def _reference(x, w_qkv, w_out, b_out, *, heads, dim_head):
    """Plain-JAX transcription of the PyTorch forward, for verification."""
    B, N, _ = x.shape
    hidden = heads * dim_head
    scale = dim_head ** (-0.5)
    qkv = x @ w_qkv
    q, k, v = jnp.split(qkv, 3, axis=-1)                    # each (B, N, hidden)

    def rearr(t):  # 'b n (h d) -> b h d n'
        return jnp.transpose(t.reshape(B, N, heads, dim_head), (0, 2, 3, 1))

    q, k, v = rearr(q), rearr(k), rearr(v)
    q = jax.nn.softmax(q, axis=-2) * scale
    k = jax.nn.softmax(k, axis=-1)
    ctx = jnp.einsum("bhdn,bhen->bhde", k, v)
    out = jnp.einsum("bhde,bhdn->bhen", ctx, q)
    out = jnp.transpose(out, (0, 3, 1, 2)).reshape(B, N, hidden)  # 'b h d n -> b n (h d)'
    return out @ w_out + b_out


if __name__ == "__main__":
    # Small, module-consistent shapes: defaults heads=4, dim_head=32;
    # a 16x16 feature map flattened to N=256 tokens, query_dim=8 channels.
    B, C_IN = 2, 8
    HEADS, DIM_HEAD = 4, 32
    HIDDEN = HEADS * DIM_HEAD
    SPATIAL = 16
    N = SPATIAL * SPATIAL                                    # 256 tokens

    key = jax.random.PRNGKey(0)
    k_x, k_qkv, k_out, k_b = jax.random.split(key, 4)

    x = jax.random.normal(k_x, (B, N, C_IN), dtype=jnp.float32)
    w_qkv = jax.random.normal(k_qkv, (C_IN, 3 * HIDDEN), dtype=jnp.float32) * (C_IN ** -0.5)
    w_out = jax.random.normal(k_out, (HIDDEN, C_IN), dtype=jnp.float32) * (HIDDEN ** -0.5)
    b_out = jax.random.normal(k_b, (C_IN,), dtype=jnp.float32) * 0.01

    y_ref = _reference(x, w_qkv, w_out, b_out, heads=HEADS, dim_head=DIM_HEAD)

    # f32 path (exact formulation; only approx-reciprocal differs from reference).
    y = linear_attention(x, w_qkv, w_out, b_out, heads=HEADS, dim_head=DIM_HEAD)
    y = jax.block_until_ready(y)
    assert y.shape == (B, N, C_IN)
    assert jnp.allclose(y, y_ref, atol=2e-4, rtol=2e-3), "f32 mismatch vs reference"

    # bf16-matmul fast path (halved DMA bytes, ~2x MXU throughput); looser tol.
    y_bf16 = linear_attention(x, w_qkv, w_out, b_out, heads=HEADS,
                              dim_head=DIM_HEAD, matmul_dtype=jnp.bfloat16)
    y_bf16 = jax.block_until_ready(y_bf16)
    assert jnp.allclose(y_bf16, y_ref, atol=8e-4, rtol=3e-2), "bf16 mismatch vs reference"

    print("KERNEL_OK")
</pallas_src>

<mosaic_0001>
module attributes {stable_mosaic.version = 11 : i64} {
  func.func @_linear_attention_kernel(%arg0: i32, %arg1: memref<1x256x128xf32, #tpu.memory_space<vmem>>, %arg2: memref<128x384xf32, #tpu.memory_space<vmem>>, %arg3: memref<128x128xf32, #tpu.memory_space<vmem>>, %arg4: memref<1x128xf32, #tpu.memory_space<vmem>>, %arg5: memref<128x128xf32, #tpu.memory_space<vmem>>, %arg6: memref<1x256x128xf32, #tpu.memory_space<vmem>>) attributes {dimension_semantics = [#tpu.dimension_semantics<parallel>], iteration_bounds = array<i64: 2>, scalar_prefetch = 0 : i64, scratch_operands = 0 : i64, tpu.core_type = #tpu.core_type<tc>, window_params = [{transform_indices = @transform_0, window_bounds = array<i64: 1, 256, 128>}, {pipeline_mode = #tpu.pipeline_mode<synchronous>, transform_indices = @transform_1, window_bounds = array<i64: 128, 384>}, {pipeline_mode = #tpu.pipeline_mode<synchronous>, transform_indices = @transform_2, window_bounds = array<i64: 128, 128>}, {pipeline_mode = #tpu.pipeline_mode<synchronous>, transform_indices = @transform_3, window_bounds = array<i64: 1, 128>}, {pipeline_mode = #tpu.pipeline_mode<synchronous>, transform_indices = @transform_4, window_bounds = array<i64: 128, 128>}, {transform_indices = @transform_5, window_bounds = array<i64: 1, 256, 128>}]} {
    %c0 = arith.constant 0 : index
    %c0_0 = arith.constant 0 : index
    %c0_1 = arith.constant 0 : index
    %0 = vector.load %arg1[%c0, %c0_0, %c0_1] : memref<1x256x128xf32, #tpu.memory_space<vmem>>, vector<1x256x128xf32>
    %1 = vector.shape_cast %0 : vector<1x256x128xf32> to vector<256x128xf32>
    %c0_2 = arith.constant 0 : index
    %c0_3 = arith.constant 0 : index
    %2 = vector.load %arg2[%c0_2, %c0_3] : memref<128x384xf32, #tpu.memory_space<vmem>>, vector<128x384xf32>
    %cst = arith.constant dense<0.000000e+00> : vector<256x384xf32>
    %3 = tpu.matmul %1, %2, %cst {dimension_numbers = #tpu.dot_dimension_numbers<[1], [0], [0], [1], [0, 0, 1, 1], [], []>} : vector<256x128xf32>, vector<128x384xf32>, vector<256x384xf32> -> vector<256x384xf32>
    %4 = vector.extract_strided_slice %3 {offsets = [0, 0], sizes = [256, 128], strides = [1, 1]} : vector<256x384xf32> to vector<256x128xf32>
    %5 = vector.extract_strided_slice %3 {offsets = [0, 128], sizes = [256, 128], strides = [1, 1]} : vector<256x384xf32> to vector<256x128xf32>
    %6 = vector.extract_strided_slice %3 {offsets = [0, 256], sizes = [256, 128], strides = [1, 1]} : vector<256x384xf32> to vector<256x128xf32>
    %c0_4 = arith.constant 0 : index
    %c0_5 = arith.constant 0 : index
    %7 = vector.load %arg5[%c0_4, %c0_5] : memref<128x128xf32, #tpu.memory_space<vmem>>, vector<128x128xf32>
    %cst_6 = arith.constant dense<0xFF800000> : vector<256xf32>
    %8 = vector.multi_reduction <maximumf>, %4, %cst_6 [1] : vector<256x128xf32> to vector<256xf32>
    %9 = vector.shape_cast %8 : vector<256xf32> to vector<256x1xf32>
    %10 = vector.broadcast %9 : vector<256x1xf32> to vector<256x128xf32>
    %11 = arith.subf %4, %10 : vector<256x128xf32>
    %12 = math.exp %11 : vector<256x128xf32>
    %cst_7 = arith.constant dense<0.000000e+00> : vector<256x128xf32>
    %13 = tpu.matmul %12, %7, %cst_7 {dimension_numbers = #tpu.dot_dimension_numbers<[1], [0], [0], [1], [0, 0, 1, 1], [], []>} : vector<256x128xf32>, vector<128x128xf32>, vector<256x128xf32> -> vector<256x128xf32>
    %cst_8 = arith.constant dense<0xFF800000> : vector<128xf32>
    %14 = vector.multi_reduction <maximumf>, %5, %cst_8 [0] : vector<256x128xf32> to vector<128xf32>
    %15 = vector.shape_cast %14 : vector<128xf32> to vector<1x128xf32>
    %16 = vector.broadcast %15 : vector<1x128xf32> to vector<256x128xf32>
    %17 = arith.subf %5, %16 : vector<256x128xf32>
    %18 = math.exp %17 : vector<256x128xf32>
    %cst_9 = arith.constant dense<0.000000e+00> : vector<128xf32>
    %19 = vector.multi_reduction <add>, %18, %cst_9 [0] : vector<256x128xf32> to vector<128xf32>
    %20 = vector.shape_cast %19 : vector<128xf32> to vector<1x128xf32>
    %21 = tpu.reciprocal %20 {approx = true} : vector<1x128xf32> -> vector<1x128xf32>
    %22 = vector.broadcast %21 : vector<1x128xf32> to vector<256x128xf32>
    %23 = arith.mulf %18, %22 : vector<256x128xf32>
    %24 = tpu.transpose %23, [1, 0] : vector<256x128xf32> -> vector<128x256xf32>
    %cst_10 = arith.constant dense<0.000000e+00> : vector<128x128xf32>
    %25 = tpu.matmul %24, %6, %cst_10 {dimension_numbers = #tpu.dot_dimension_numbers<[1], [0], [0], [1], [0, 0, 1, 1], [], []>} : vector<128x256xf32>, vector<256x128xf32>, vector<128x128xf32> -> vector<128x128xf32>
    %26 = arith.mulf %25, %7 : vector<128x128xf32>
    %cst_11 = arith.constant dense<0.000000e+00> : vector<256x128xf32>
    %27 = tpu.matmul %12, %26, %cst_11 {dimension_numbers = #tpu.dot_dimension_numbers<[1], [0], [0], [1], [0, 0, 1, 1], [], []>} : vector<256x128xf32>, vector<128x128xf32>, vector<256x128xf32> -> vector<256x128xf32>
    %28 = tpu.reciprocal %13 {approx = true} : vector<256x128xf32> -> vector<256x128xf32>
    %29 = arith.mulf %27, %28 : vector<256x128xf32>
    %c0_12 = arith.constant 0 : index
    %c0_13 = arith.constant 0 : index
    %30 = vector.load %arg3[%c0_12, %c0_13] : memref<128x128xf32, #tpu.memory_space<vmem>>, vector<128x128xf32>
    %cst_14 = arith.constant dense<0.000000e+00> : vector<256x128xf32>
    %31 = tpu.matmul %29, %30, %cst_14 {dimension_numbers = #tpu.dot_dimension_numbers<[1], [0], [0], [1], [0, 0, 1, 1], [], []>} : vector<256x128xf32>, vector<128x128xf32>, vector<256x128xf32> -> vector<256x128xf32>
    %c0_15 = arith.constant 0 : index
    %c0_16 = arith.constant 0 : index
    %32 = vector.load %arg4[%c0_15, %c0_16] : memref<1x128xf32, #tpu.memory_space<vmem>>, vector<1x128xf32>
    %33 = vector.broadcast %32 : vector<1x128xf32> to vector<256x128xf32>
    %34 = arith.addf %31, %33 : vector<256x128xf32>
    %c0_17 = arith.constant 0 : index
    %c0_18 = arith.constant 0 : index
    %c0_19 = arith.constant 0 : index
    %35 = vector.load %arg6[%c0_17, %c0_18, %c0_19] : memref<1x256x128xf32, #tpu.memory_space<vmem>>, vector<1x256x128xf32>
    %36 = vector.shape_cast %35 : vector<1x256x128xf32> to vector<256x128xf32>
    %37 = vector.shape_cast %34 : vector<256x128xf32> to vector<1x256x128xf32>
    tpu.vector_store %arg6[%c0_17, %c0_18, %c0_19], %37 {strides = array<i32>} : memref<1x256x128xf32, #tpu.memory_space<vmem>>, vector<1x256x128xf32>,
    return
  }
  func.func @transform_0(%arg0: i32) -> (i32, i32, i32) {
    %c0_i32 = arith.constant 0 : i32
    %c0_i32_0 = arith.constant 0 : i32
    %c0_i32_1 = arith.constant 0 : i32
    return %arg0, %c0_i32, %c0_i32_0 : i32, i32, i32
  }
  func.func @transform_1(%arg0: i32) -> (i32, i32) {
    %c0_i32 = arith.constant 0 : i32
    %c0_i32_0 = arith.constant 0 : i32
    %c0_i32_1 = arith.constant 0 : i32
    return %c0_i32, %c0_i32_0 : i32, i32
  }
  func.func @transform_2(%arg0: i32) -> (i32, i32) {
    %c0_i32 = arith.constant 0 : i32
    %c0_i32_0 = arith.constant 0 : i32
    %c0_i32_1 = arith.constant 0 : i32
    return %c0_i32, %c0_i32_0 : i32, i32
  }
  func.func @transform_3(%arg0: i32) -> (i32, i32) {
    %c0_i32 = arith.constant 0 : i32
    %c0_i32_0 = arith.constant 0 : i32
    %c0_i32_1 = arith.constant 0 : i32
    return %c0_i32, %c0_i32_0 : i32, i32
  }
  func.func @transform_4(%arg0: i32) -> (i32, i32) {
    %c0_i32 = arith.constant 0 : i32
    %c0_i32_0 = arith.constant 0 : i32
    %c0_i32_1 = arith.constant 0 : i32
    return %c0_i32, %c0_i32_0 : i32, i32
  }
  func.func @transform_5(%arg0: i32) -> (i32, i32, i32) {
    %c0_i32 = arith.constant 0 : i32
    %c0_i32_0 = arith.constant 0 : i32
    %c0_i32_1 = arith.constant 0 : i32
    return %arg0, %c0_i32, %c0_i32_0 : i32, i32, i32
  }
}

</mosaic_0001>

<bundles_post_ra>
// kernel: tpu_custom_call.1
= control target key start
LH: loop header
LB: loop body
LE: loop exit
PB: predicated region body
PF: predicated region fallthrough
CT: control target
= control target key end

     0   :  { %10 = vsyncpa [#allocation3], 0  ;;  %s5037_s0 = inlined_call_operand.hbm [shape: f32[2,256,128], index: 0, kind: input, shape index: {}]   ;;  %s5038_s1 = inlined_call_operand.hbm [shape: f32[128,384], index: 1, kind: input, shape index: {}]   ;;  %s5039_s2 = inlined_call_operand.hbm [shape: f32[128,128], index: 2, kind: input, shape index: {}]   ;;  %s5040_s3 = inlined_call_operand.vmem [shape: f32[1,128], index: 3, kind: input, shape index: {}]   ;;  %s5041_s4 = inlined_call_operand.hbm [shape: f32[128,128], index: 4, kind: input, shape index: {}]   ;;  %s5042_s5 = inlined_call_operand.hbm [shape: f32[2,256,128], index: 5, kind: output, shape index: {}]  }
   0x1   :  { %12 = vsyncpa [#allocation3 + $0x1], 0 }
   0x2   :  { %13 = vsyncpa [#allocation6], 0 }
   0x3   :  { %14 = vsyncpa [#allocation9], 0 }
   0x4   :  { %15 = vsyncpa [#allocation4], 0 }
   0x5   :  { %17 = vsyncpa [#allocation4 + $0x1], 0  ;;  %s3824_s18 = smov 0   ;;  %s3826_s19 = smov 0  }
   0x6   :  { %s3828_s20 = smov 0   ;;  %s3830_s21 = smov 0  }
   0x7 LB: > { %s3845_s22 = sadd.s32 4294967295, %s3780_s21   ;;  %s2363_s23 = sadd.s32 4294967294, %s3780_s21   ;;  %s3780_s21 = sphi %s3830_s21, %s5186_s21   ;;  %s3776_s20 = sphi %s3828_s20, %s5185_s20   ;;  %s3772_s19 = sphi %s3826_s19, %s5184_s19   ;;  %s3768_s18 = sphi %s3824_s18, %s5183_s18  }
   0x8   : > { %p43_p0 = scmp.ne.s32.totalorder %s3772_s19, %s3768_s18  ;;  %p5043_p1 = scmp.eq.s32.totalorder %s3845_s22, 0 }
   0x9   : > { %p157_p3 = scmp.eq.s32.totalorder %s2363_s23, 1  ;;  %p2364_p5 = scmp.ge.s32.totalorder %s3780_s21, 1 }
   0xa   : > { %p3854_p4 = por %p5043_p1, %p43_p0  ;;  %p164_p7 = scmp.lt.s32.totalorder %s3780_s21, 3 }
   0xb   : > { %p3859_p6 = por %p157_p3, %p43_p0  ;;  %s3782_s27 = smov [#allocation5]  }
   0xc   : > { %s5076_s24 = scalar_select %p3854_p4, 1, 0 }
   0xd   : > { %s5077_s25 = scalar_select %p3859_p6, 1, 0 }
   0xe   : > { %p3864_p8 = pnand %p2364_p5, %p164_p7  ;;  %s176_s28 = sshll.u32 %s3782_s27, 4  ;;  %s3868_s28 = int_to_ptr.vmem [resolvable:$true] %s176_s28 }
   0xf   : > { %s3783_s30 = smov [#allocation7]   ;;  %s3592_s9 = scalar_lea.hbm %s5038_s1, 6144 }
  0x10   : > { %s5078_s26 = scalar_select %p3864_p8, 1, 0 }
  0x11   : > { %p3202_p9 = pneg %p3864_p8  ;;  %s189_s6 = sshll.u32 %s3783_s30, 4  ;;  %s3879_s6 = int_to_ptr.vmem [resolvable:$true] %s189_s6 }
  0x12   : > { %p3593_p12 = scmp.ne.s32.totalorder %s5038_s1, %s3592_s9  ;;  %p3599_p5 = scmp.lt.u32.totalorder %s3592_s9, %s5038_s1 }
  0x13   : > { %p3875_p11 = pnand %p3202_p9, %p5043_p1 }
  0x15   : > { %p3889_p13 = pneg %p3875_p11 }
  0x17   : > { %p3595_p0 = pnand %p3889_p13, %p3593_p12 }
  0x19   : > { %p3596_p3 = pneg %p3595_p0 }
  0x1b   : > { %p3601_p7 = pnand %p3599_p5, %p3596_p3 }
  0x1d   : > { %3604 = shalt.err (!%p3601_p7)
}
  0x1e   : > { %s3605_s15 = scalar_lea.vmem %s3868_s28, 6144  ;;  %p3613_p2 = scmp.lt.s32.totalorder %s3868_s28, %s3868_s28 }
  0x1f   : > { %p3606_p9 = scmp.ne.s32.totalorder %s3868_s28, %s3605_s15  ;;  %p3614_p6 = scmp.lt.s32.totalorder %s3605_s15, %s3605_s15 }
  0x21   : > { %p3608_p10 = pnand %p3606_p9, %p3889_p13  ;;  %p3615_p12 = por %p3614_p6, %p3613_p2 }
  0x23   : > { %p3609_p1 = pneg %p3608_p10 }
  0x25   : > { %p3616_p0 = pnand %p3615_p12, %p3609_p1 }
  0x27   : > { %3619 = shalt.err (!%p3616_p0)
}
  0x28   : > { %s3784_s16 = smov 384   ;;  %s3785_s17 = smov 24  }
  0x29   : > { %3205 = dma.hbm_to_vmem [thread:$0]  (!%p3875_p11), %s5038_s1, 6144, %s3868_s28, [#allocation6], %s3784_s16, %s3784_s16, %s3785_s17  }
  0x2a   : > { %s3620_s8 = scalar_lea.hbm %s5039_s2, 2048 }
  0x2b   : > { %p3621_p2 = scmp.ne.s32.totalorder %s5039_s2, %s3620_s8  ;;  %p3627_p10 = scmp.lt.u32.totalorder %s3620_s8, %s5039_s2 }
  0x2d   : > { %p3623_p1 = pnand %p3621_p2, %p3889_p13 }
  0x2f   : > { %p3624_p6 = pneg %p3623_p1 }
  0x31   : > { %p3629_p3 = pnand %p3627_p10, %p3624_p6 }
  0x33   : > { %3632 = shalt.err (!%p3629_p3)
}
  0x34   : > { %s3633_s28 = scalar_lea.vmem %s3879_s6, 2048  ;;  %p3641_p12 = scmp.lt.s32.totalorder %s3879_s6, %s3879_s6 }
  0x35   : > { %p3634_p5 = scmp.ne.s32.totalorder %s3879_s6, %s3633_s28  ;;  %p3642_p0 = scmp.lt.s32.totalorder %s3633_s28, %s3633_s28 }
  0x37   : > { %p3636_p7 = pnand %p3634_p5, %p3889_p13  ;;  %p3643_p2 = por %p3642_p0, %p3641_p12 }
  0x39   : > { %p3637_p9 = pneg %p3636_p7 }
  0x3b   : > { %p3644_p1 = pnand %p3643_p2, %p3637_p9 }
  0x3d   : > { %3647 = shalt.err (!%p3644_p1)
}
  0x3e   : > { %s3786_s14 = smov 128   ;;  %s3787_s15 = smov 8  }
  0x3f   : > { %3208 = dma.hbm_to_vmem [thread:$0]  (!%p3875_p11), %s5039_s2, 2048, %s3879_s6, [#allocation6], %s3786_s14, %s3786_s14, %s3787_s15  }
  0x40   : > { %s3788_s23 = smov [#allocation8]   ;;  %s3937_s30 = sadd.s32 1, %s3780_s21  }
  0x41   : > { %s205_s27 = sshll.u32 %s3788_s23, 4  ;;  %s3648_s9 = scalar_lea.hbm %s5041_s4, 2048  ;;  %s206_s27 = int_to_ptr.vmem [resolvable:$true] %s205_s27 }
  0x42   : > { %p3649_p6 = scmp.ne.s32.totalorder %s5041_s4, %s3648_s9  ;;  %p3655_p5 = scmp.lt.u32.totalorder %s3648_s9, %s5041_s4 }
  0x44   : > { %p3651_p10 = pnand %p3649_p6, %p3889_p13 }
  0x46   : > { %p3652_p3 = pneg %p3651_p10 }
  0x48   : > { %p3657_p7 = pnand %p3655_p5, %p3652_p3 }
  0x4a   : > { %3660 = shalt.err (!%p3657_p7)
}
  0x4b   : > { %s3661_s6 = scalar_lea.vmem %s206_s27, 2048  ;;  %p3669_p2 = scmp.lt.s32.totalorder %s206_s27, %s206_s27 }
  0x4c   : > { %p3662_p9 = scmp.ne.s32.totalorder %s206_s27, %s3661_s6  ;;  %p3670_p1 = scmp.lt.s32.totalorder %s3661_s6, %s3661_s6 }
  0x4e   : > { %p3664_p12 = pnand %p3662_p9, %p3889_p13  ;;  %p3671_p4 = por %p3670_p1, %p3669_p2 }
  0x50   : > { %p3665_p0 = pneg %p3664_p12 }
  0x52   : > { %p3672_p8 = pnand %p3671_p4, %p3665_p0 }
  0x54   : > { %3675 = shalt.err (!%p3672_p8)
}
  0x55   : > { %3211 = dma.hbm_to_vmem [thread:$0]  (!%p3875_p11), %s5041_s4, 2048, %s206_s27, [#allocation9], %s3786_s14, %s3786_s14, %s3787_s15  }
  0x56   : > { %s27_s12 = ssub.s32 %s3780_s21, %s3937_s30  ;;  %s30_s29 = sadd.s32 1, %s3776_s20 }
  0x57   : > { %p28_p4 = scmp.eq.s32.totalorder %s27_s12, 0  ;;  %p37_p8 = scmp.ne.s32.totalorder %s3776_s20, %s3772_s19 }
  0x58   : > { %p38_p13 = scmp.eq.s32.totalorder %s3780_s21, 0  ;;  %p3223_p6 = scmp.lt.s32.totalorder %s3780_s21, 2 }
  0x59   : > { %s3968_s23 = scalar_select %p28_p4, %s3776_s20, %s30_s29  }
  0x5a   : > { %p39_p10 = por %p38_p13, %p37_p8  ;;  %p5081_p3 = scmp.eq.s32.totalorder %s3845_s22, 1 }
  0x5b   : > { %s219_s8 = sand.u32 1, %s3776_s20   ;;  %s2384_s9 = sshll.u32 %s3780_s21, 12 }
  0x5c   : > { %p3972_p5 = por %p5081_p3, %p37_p8  ;;  %s2369_s10 = sshll.u32 %s219_s8, 8 }
  0x5d   : > { %s3981_s27 = scalar_lea.hbm %s5037_s0, %s2384_s9  ;;  %s223_s28 = scalar_lea.vmem [#allocation2], %s2369_s10 }
  0x5e   : > { %s230_s6 = sshll.u32 %s223_s28, 4  ;;  %p3983_p11 = pnand %p3223_p6, %p39_p10  ;;  %s3987_s6 = int_to_ptr.vmem [resolvable:$true] %s230_s6 }
  0x5f   : > { %s3989_s17 = scalar_lea.sflag [#allocation3], %s219_s8  ;;  %s3676_s12 = scalar_lea.hbm %s3981_s27, 4096 }
  0x60   : > { %p3677_p7 = scmp.ne.s32.totalorder %s3981_s27, %s3676_s12  ;;  %p3678_p9 = pneg %p3983_p11 }
  0x61   : > { %s3681_s10 = scalar_lea.hbm %s5037_s0, 8192  ;;  %p3682_p2 = scmp.lt.u32.totalorder %s3981_s27, %s5037_s0 }
  0x62   : > { %p3679_p12 = pnand %p3678_p9, %p3677_p7  ;;  %p3683_p1 = scmp.lt.u32.totalorder %s3681_s10, %s3676_s12 }
  0x63   : > { %p3685_p8 = scmp.lt.u32.totalorder %s3676_s12, %s3981_s27 }
  0x64   : > { %p3680_p0 = pneg %p3679_p12  ;;  %p3684_p4 = por %p3683_p1, %p3682_p2 }
  0x66   : > { %p3686_p13 = por %p3685_p8, %p3684_p4 }
  0x68   : > { %p3687_p6 = pnand %p3686_p13, %p3680_p0 }
  0x6a   : > { %3690 = shalt.err (!%p3687_p6)
}
  0x6b   : > { %s3691_s8 = scalar_lea.vmem %s3987_s6, 4096  ;;  %s3789_s28 = smov [#allocation2]  }
  0x6c   : > { %p3692_p10 = scmp.ne.s32.totalorder %s3987_s6, %s3691_s8  ;;  %s3696_s29 = sshll.u32 %s3789_s28, 4  ;;  %s3697_s29 = int_to_ptr.vmem [resolvable:$false] %s3696_s29 }
  0x6d   : > { %s3698_s9 = scalar_lea.vmem %s3697_s29, 8192  ;;  %p3699_p12 = scmp.lt.s32.totalorder %s3987_s6, %s3697_s29 }
  0x6e   : > { %p3694_p3 = pnand %p3692_p10, %p3678_p9  ;;  %p3700_p2 = scmp.lt.s32.totalorder %s3698_s9, %s3691_s8 }
  0x70   : > { %p3695_p7 = pneg %p3694_p3  ;;  %p3701_p1 = por %p3700_p2, %p3699_p12 }
  0x72   : > { %p3702_p4 = pnand %p3701_p1, %p3695_p7 }
  0x74   : > { %3705 = shalt.err (!%p3702_p4)
}
  0x75   : > { %3215 = dma.hbm_to_vmem [thread:$0]  (!%p3983_p11), %s3981_s27, 4096, %s3987_s6, %s3989_s17, %s3786_s14, %s3786_s14, %s3787_s15  }
  0x76   : > { %p5084_p9 = scmp.ne.s32.totalorder %s5078_s26, 0 }
  0x78   : > { %242 = sbr.rel (%p5084_p9) target bundleno = 1531 (0x5fb), region = 40 }
  0x7f   : > { %s4023_s12 = sand.u32 1, %s3772_s19   ;;  %p5085_p0 = scmp.ne.s32.totalorder %s5076_s24, 0 }
  0x80   : > { %s2373_s10 = sshll.u32 %s4023_s12, 8  ;;  %s245_s11 = scalar_lea.sflag [#allocation3], %s4023_s12 }
  0x81   : > { %s4029_s16 = scalar_lea.vmem [#allocation2], %s2373_s10 }
  0x82   : > { %3751 = dma.done.wait (%p5085_p0), %s245_s11, 4096  }
  0x83   : > { %3753 = vsyncadd (%p5085_p0), %s245_s11, 4294963200  ;;  %p5086_p11 = scmp.eq.s32.totalorder %s3845_s22, 0 }
  0x85   : > { %3755 = dma.done.wait (%p5086_p11), [#allocation6], 8192   ;;  %p5087_p8 = pmov %p5086_p11 }
  0x87   : > { %3757 = vsyncadd (%p5087_p8), [#allocation6], 4294959104  ;;  %p5088_p13 = pmov %p5087_p8 }
  0x88   : > { %p5089_p6 = pmov %p5087_p8 }
  0x89   : > { %3759 = dma.done.wait (%p5088_p13), [#allocation9], 2048  }
  0x8a   : > { %3761 = vsyncadd (%p5089_p6), [#allocation9], 4294965248  ;;  %v3790_v0 = vmov 0.0   ;;  %v320_v1 = vld [vmem:[#allocation5 + $0x8] sm:$0xff]  ;;  %v323_v2 = vld [vmem:[#allocation5 + $0x20] sm:$0xff]  ;;  %s4922_s14 = scalar_lea.vmem [#allocation10], %s2373_s10 }
  0x8b   : > { %431 = vmatprep.mubr.f32.mxu0 %v3790_v0  ;;  %575 = vmatprep.mubr.f32.mxu1 %v3790_v0  ;;  %v319_v3 = vld [vmem:[#allocation5] sm:$0xff]  ;;  %v2978_v4 = vpack.c.bf16 %v323_v2, %v320_v1  ;;  %v322_v5 = vld [vmem:[#allocation5 + $0x18] sm:$0xff]  ;;  %v329_v7 = vld [vmem:[#allocation5 + $0x50] sm:$0xff]  ;;  %s2385_s15 = sshll.u32 %s3845_s22, 12  ;;  %s2261_s27 = sshll.u32 %s4922_s14, 4  ;;  %s4990_s27 = int_to_ptr.vmem [resolvable:$true] %s2261_s27 }
  0x8c   : > { %v326_v6 = vld [vmem:[#allocation5 + $0x38] sm:$0xff]  ;;  %v2980_v8 = vpack.c.bf16 %v322_v5, %v319_v3  ;;  %v325_v10 = vld [vmem:[#allocation5 + $0x30] sm:$0xff]  ;;  %v328_v11 = vld [vmem:[#allocation5 + $0x48] sm:$0xff]  ;;  %s4988_s13 = scalar_lea.hbm %s5042_s5, %s2385_s15  ;;  %s2248_s22 = scalar_lea.sflag [#allocation4], %s4023_s12 }
  0x8d   : > { %v2982_v9 = vpack.c.bf16 %v329_v7, %v326_v6  ;;  %v332_v12 = vld [vmem:[#allocation5 + $0x68] sm:$0xff]  ;;  %2979 = vmatprep.subr.bf16.mxu0 %v2978_v4  ;;  %v335_v13 = vld [vmem:[#allocation5 + $0x80] sm:$0xff]  ;;  %3170 = vmatprep.subr.bf16.mxu1 %v2978_v4  ;;  %v2984_v14 = vpack.c.bf16 %v328_v11, %v325_v10  ;;  %v334_v17 = vld [vmem:[#allocation5 + $0x78] sm:$0xff]  ;;  %s3706_s8 = scalar_lea.vmem %s4990_s27, 4096  ;;  %s3791_s28 = smov [#allocation10]  }
  0x8e   : > { %2981 = vmatpush1.bf16.msra.mxu0 %v2980_v8  ;;  %3178 = vmatpush1.bf16.msra.mxu1 %v2980_v8  ;;  %v2986_v15 = vpack.c.bf16 %v335_v13, %v332_v12  ;;  %v331_v16 = vld [vmem:[#allocation5 + $0x60] sm:$0xff]  ;;  %v338_v18 = vld [vmem:[#allocation5 + $0x98] sm:$0xff]  ;;  %v341_v19 = vld [vmem:[#allocation5 + $0xb0] sm:$0xff]  ;;  %p3707_p10 = scmp.ne.s32.totalorder %s4990_s27, %s3706_s8  ;;  %s3710_s29 = sshll.u32 %s3791_s28, 4  ;;  %s3711_s29 = int_to_ptr.vmem [resolvable:$false] %s3710_s29 }
  0x8f   : > { %2983 = vmatprep.subr.bf16.mxu0 %v2982_v9  ;;  %3171 = vmatprep.subr.bf16.mxu1 %v2982_v9  ;;  %v2988_v20 = vpack.c.bf16 %v334_v17, %v331_v16  ;;  %v2990_v21 = vpack.c.bf16 %v341_v19, %v338_v18  ;;  %v337_v22 = vld [vmem:[#allocation5 + $0x90] sm:$0xff]  ;;  %v340_v23 = vld [vmem:[#allocation5 + $0xa8] sm:$0xff]  ;;  %v347_v25 = vld [vmem:[#allocation5 + $0xe0] sm:$0xff]  ;;  %s3712_s9 = scalar_lea.vmem %s3711_s29, 8192  ;;  %p3713_p12 = scmp.lt.s32.totalorder %s4990_s27, %s3711_s29 }
  0x90   : > { %v344_v24 = vld [vmem:[#allocation5 + $0xc8] sm:$0xff]  ;;  %v2992_v26 = vpack.c.bf16 %v340_v23, %v337_v22  ;;  %v343_v28 = vld [vmem:[#allocation5 + $0xc0] sm:$0xff]  ;;  %v346_v29 = vld [vmem:[#allocation5 + $0xd8] sm:$0xff]  ;;  %p3708_p3 = pnand %p3707_p10, %p3972_p5  ;;  %p3714_p2 = scmp.lt.s32.totalorder %s3712_s9, %s3706_s8 }
  0x91   : > { %v2994_v27 = vpack.c.bf16 %v347_v25, %v344_v24  ;;  %v350_v30 = vld [vmem:[#allocation5 + $0xf8] sm:$0xff]  ;;  %v353_v31 = vld [vmem:[#allocation5 + $0x110] sm:$0xff]  ;;  %v2996_v32 = vpack.c.bf16 %v346_v29, %v343_v28  ;;  %v352_v35 = vld [vmem:[#allocation5 + $0x108] sm:$0xff] }
  0x92   : > { %2985 = vmatpush1.bf16.msra.mxu0 %v2984_v14  ;;  %3179 = vmatpush1.bf16.msra.mxu1 %v2984_v14  ;;  %v2998_v33 = vpack.c.bf16 %v353_v31, %v350_v30  ;;  %v349_v34 = vld [vmem:[#allocation5 + $0xf0] sm:$0xff]  ;;  %v356_v36 = vld [vmem:[#allocation5 + $0x128] sm:$0xff]  ;;  %v359_v37 = vld [vmem:[#allocation5 + $0x140] sm:$0xff]  ;;  %p3709_p7 = pneg %p3708_p3  ;;  %p3715_p1 = por %p3714_p2, %p3713_p12 }
  0x93   : > { %2987 = vmatprep.subr.bf16.mxu0 %v2986_v15  ;;  %3172 = vmatprep.subr.bf16.mxu1 %v2986_v15  ;;  %v3000_v38 = vpack.c.bf16 %v352_v35, %v349_v34  ;;  %v3002_v39 = vpack.c.bf16 %v359_v37, %v356_v36  ;;  %v355_v40 = vld [vmem:[#allocation5 + $0x120] sm:$0xff]  ;;  %v358_v41 = vld [vmem:[#allocation5 + $0x138] sm:$0xff]  ;;  %v365_v43 = vld [vmem:[#allocation5 + $0x170] sm:$0xff] }
  0x94   : > { %v362_v42 = vld [vmem:[#allocation5 + $0x158] sm:$0xff]  ;;  %v3004_v44 = vpack.c.bf16 %v358_v41, %v355_v40  ;;  %v361_v46 = vld [vmem:[#allocation5 + $0x150] sm:$0xff]  ;;  %v364_v47 = vld [vmem:[#allocation5 + $0x168] sm:$0xff]  ;;  %p3716_p4 = pnand %p3715_p1, %p3709_p7 }
  0x95   : > { %v3006_v45 = vpack.c.bf16 %v365_v43, %v362_v42  ;;  %v321_v48 = vld [vmem:[#allocation5 + $0x10] sm:$0xff]  ;;  %v324_v49 = vld [vmem:[#allocation5 + $0x28] sm:$0xff]  ;;  %v3008_v50 = vpack.c.bf16 %v364_v47, %v361_v46  ;;  %v327_v52 = vld [vmem:[#allocation5 + $0x40] sm:$0xff] }
  0x96   : > { %2989 = vmatpush1.bf16.msra.mxu0 %v2988_v20  ;;  %3180 = vmatpush1.bf16.msra.mxu1 %v2988_v20  ;;  %v3010_v51 = vpack.c.bf16 %v324_v49, %v321_v48  ;;  %v330_v53 = vld [vmem:[#allocation5 + $0x58] sm:$0xff]  ;;  %v4046_v54 = vld [vmem:[%s4029_s16] sm:$0xff]  ;;  %v333_v57 = vld [vmem:[#allocation5 + $0x70] sm:$0xff] }
  0x97   : > { %2991 = vmatprep.subr.bf16.mxu0 %v2990_v21  ;;  %3173 = vmatprep.subr.bf16.mxu1 %v2990_v21  ;;  %v4049_v55 = vld [vmem:[%s4029_s16 + $0xc0] sm:$0xff]  ;;  %v3014_v56 = vpack.c.bf16 %v330_v53, %v327_v52  ;;  %v336_v58 = vld [vmem:[#allocation5 + $0x88] sm:$0xff]  ;;  %v342_v63 = vld [vmem:[#allocation5 + $0xb8] sm:$0xff] }
  0x98   : > { %v4055_v59 = vld [vmem:[%s4029_s16 + $0x8] sm:$0xff]  ;;  %v3018_v61 = vpack.c.bf16 %v336_v58, %v333_v57  ;;  %v339_v62 = vld [vmem:[#allocation5 + $0xa0] sm:$0xff]  ;;  %v4065_v1 = vld [vmem:[%s4029_s16 + $0x10] sm:$0xff] }
  0x99   : > { %v4059_v60 = vld [vmem:[%s4029_s16 + $0xc8] sm:$0xff]  ;;  %v4069_v2 = vld [vmem:[%s4029_s16 + $0xd0] sm:$0xff]  ;;  %v3022_v3 = vpack.c.bf16 %v342_v63, %v339_v62  ;;  %v290_v6 = vld [vmem:[%s4029_s16 + $0x18] sm:$0xff] }
  0x9a   : > { %2993 = vmatpush1.bf16.msra.mxu0 %v2992_v26  ;;  %3181 = vmatpush1.bf16.msra.mxu1 %v2992_v26  ;;  %v345_v4 = vld [vmem:[#allocation5 + $0xd0] sm:$0xff]  ;;  %v348_v5 = vld [vmem:[#allocation5 + $0xe8] sm:$0xff]  ;;  %v4077_v7 = vld [vmem:[%s4029_s16 + $0xd8] sm:$0xff] }
  0x9b   : > { %2995 = vmatprep.subr.bf16.mxu0 %v2994_v27  ;;  %3174 = vmatprep.subr.bf16.mxu1 %v2994_v27  ;;  %v3026_v8 = vpack.c.bf16 %v348_v5, %v345_v4  ;;  %v351_v9 = vld [vmem:[#allocation5 + $0x100] sm:$0xff]  ;;  %v354_v10 = vld [vmem:[#allocation5 + $0x118] sm:$0xff]  ;;  %v357_v14 = vld [vmem:[#allocation5 + $0x130] sm:$0xff] }
  0x9c   : > { %v291_v11 = vld [vmem:[%s4029_s16 + $0x20] sm:$0xff]  ;;  %v3030_v13 = vpack.c.bf16 %v354_v10, %v351_v9  ;;  %v360_v15 = vld [vmem:[#allocation5 + $0x148] sm:$0xff]  ;;  %v366_v20 = vld [vmem:[#allocation5 + $0x178] sm:$0xff] }
  0x9d   : > { %v4084_v12 = vld [vmem:[%s4029_s16 + $0xe0] sm:$0xff]  ;;  %v292_v16 = vld [vmem:[%s4029_s16 + $0x28] sm:$0xff]  ;;  %v3034_v18 = vpack.c.bf16 %v360_v15, %v357_v14  ;;  %v293_v21 = vld [vmem:[%s4029_s16 + $0x30] sm:$0xff] }
  0x9e   : > { %2997 = vmatpush1.bf16.msra.mxu0 %v2996_v32  ;;  %3182 = vmatpush1.bf16.msra.mxu1 %v2996_v32  ;;  %v4091_v17 = vld [vmem:[%s4029_s16 + $0xe8] sm:$0xff]  ;;  %v363_v19 = vld [vmem:[#allocation5 + $0x160] sm:$0xff]  ;;  %v4098_v22 = vld [vmem:[%s4029_s16 + $0xf0] sm:$0xff] }
  0x9f   : > { %2999 = vmatprep.subr.bf16.mxu0 %v2998_v33  ;;  %3175 = vmatprep.subr.bf16.mxu1 %v2998_v33  ;;  %v3038_v23 = vpack.c.bf16 %v366_v20, %v363_v19  ;;  %v294_v24 = vld [vmem:[%s4029_s16 + $0x38] sm:$0xff]  ;;  %v295_v26 = vld [vmem:[%s4029_s16 + $0x40] sm:$0xff]  ;;  %v296_v27 = vld [vmem:[%s4029_s16 + $0x48] sm:$0xff] }
  0xa0   : > { %v4105_v25 = vld [vmem:[%s4029_s16 + $0xf8] sm:$0xff]  ;;  %v297_v28 = vld [vmem:[%s4029_s16 + $0x50] sm:$0xff]  ;;  %v299_v30 = vld [vmem:[%s4029_s16 + $0x60] sm:$0xff] }
  0xa1   : > { %v298_v29 = vld [vmem:[%s4029_s16 + $0x58] sm:$0xff]  ;;  %v300_v31 = vld [vmem:[%s4029_s16 + $0x68] sm:$0xff]  ;;  %v301_v32 = vld [vmem:[%s4029_s16 + $0x70] sm:$0xff] }
  0xa2   : > { %3001 = vmatpush1.bf16.msra.mxu0 %v3000_v38  ;;  %3183 = vmatpush1.bf16.msra.mxu1 %v3000_v38  ;;  %v302_v33 = vld [vmem:[%s4029_s16 + $0x78] sm:$0xff]  ;;  %v303_v34 = vld [vmem:[%s4029_s16 + $0x80] sm:$0xff]  ;;  %v304_v35 = vld [vmem:[%s4029_s16 + $0x88] sm:$0xff] }
  0xa3   : > { %3003 = vmatprep.subr.bf16.mxu0 %v3002_v39  ;;  %3176 = vmatprep.subr.bf16.mxu1 %v3002_v39  ;;  %v305_v36 = vld [vmem:[%s4029_s16 + $0x90] sm:$0xff]  ;;  %v306_v37 = vld [vmem:[%s4029_s16 + $0x98] sm:$0xff]  ;;  %v307_v38 = vld [vmem:[%s4029_s16 + $0xa0] sm:$0xff] }
  0xa4   : > { %v308_v39 = vld [vmem:[%s4029_s16 + $0xa8] sm:$0xff]  ;;  %v309_v40 = vld [vmem:[%s4029_s16 + $0xb0] sm:$0xff]  ;;  %v310_v41 = vld [vmem:[%s4029_s16 + $0xb8] sm:$0xff] }
  0xa5   : > { %v850_v19 = vld [vmem:[#allocation8 + $0x8] sm:$0xff] }
  0xa6   : > { %3005 = vmatpush1.bf16.msra.mxu0 %v3004_v44  ;;  %3184 = vmatpush1.bf16.msra.mxu1 %v3004_v44 }
  0xa7   : > { %3007 = vmatprep.subr.bf16.mxu0 %v3006_v45  ;;  %3177 = vmatprep.subr.bf16.mxu1 %v3006_v45 }
  0xaa   : > { %3009 = vmatpush1.bf16.msra.mxu0 %v3008_v50  ;;  %3185 = vmatpush1.bf16.msra.mxu1 %v3008_v50 }
  0xab   : > { %3011 = vmatprep.subr.bf16.mxu1 %v3010_v51 }
  0xad   : > { %432 = vmatmul.mubr.f32.vlgmr.msra.gmra.mrb[0].mxu0 %v4046_v54  ;;  %576 = vmatmul.mubr.f32.vlgmr.msra.gmra.mrb[0].mxu1 %v4049_v55 }
  0xae   : > { %437 = vmatprep.mubr.f32.mxu0 %v3790_v0  ;;  %581 = vmatprep.mubr.f32.mxu1 %v3790_v0 }
  0xaf   : > { %3013 = vmatpush3.bf16.msra.mxu1 %v3010_v51 }
  0xb0   : > { %3015 = vmatprep.subr.bf16.mxu1 %v3014_v56 }
  0xb1   : > { %438 = vmatmul.mubr.f32.gmra.mrb[2].mxu0 %v4055_v59  ;;  %582 = vmatmul.mubr.f32.gmra.mrb[2].mxu1 %v4059_v60 }
  0xb2   : > { %443 = vmatprep.mubr.f32.mxu0 %v3790_v0  ;;  %587 = vmatprep.mubr.f32.mxu1 %v3790_v0 }
  0xb3   : > { %3017 = vmatpush3.bf16.msra.mxu1 %v3014_v56 }
  0xb4   : > { %3019 = vmatprep.subr.bf16.mxu1 %v3018_v61 }
  0xb5   : > { %444 = vmatmul.mubr.f32.gmra.mrb[4].mxu0 %v4065_v1  ;;  %588 = vmatmul.mubr.f32.gmra.mrb[4].mxu1 %v4069_v2 }
  0xb6   : > { %449 = vmatprep.mubr.f32.mxu0 %v3790_v0  ;;  %593 = vmatprep.mubr.f32.mxu1 %v3790_v0 }
  0xb7   : > { %3021 = vmatpush3.bf16.msra.mxu1 %v3018_v61 }
  0xb8   : > { %3023 = vmatprep.subr.bf16.mxu1 %v3022_v3 }
  0xb9   : > { %450 = vmatmul.mubr.f32.gmra.mrb[6].mxu0 %v290_v6  ;;  %594 = vmatmul.mubr.f32.gmra.mrb[6].mxu1 %v4077_v7 }
  0xba   : > { %455 = vmatprep.mubr.f32.mxu0 %v3790_v0  ;;  %599 = vmatprep.mubr.f32.mxu1 %v3790_v0 }
  0xbb   : > { %3025 = vmatpush3.bf16.msra.mxu1 %v3022_v3 }
  0xbc   : > { %3027 = vmatprep.subr.bf16.mxu1 %v3026_v8 }
  0xbd   : > { %456 = vmatmul.mubr.f32.gmra.mrb[8].mxu0 %v291_v11  ;;  %600 = vmatmul.mubr.f32.gmra.mrb[8].mxu1 %v4084_v12 }
  0xbe   : > { %461 = vmatprep.mubr.f32.mxu0 %v3790_v0  ;;  %605 = vmatprep.mubr.f32.mxu1 %v3790_v0 }
  0xbf   : > { %3029 = vmatpush3.bf16.msra.mxu1 %v3026_v8 }
  0xc0   : > { %3031 = vmatprep.subr.bf16.mxu1 %v3030_v13 }
  0xc1   : > { %462 = vmatmul.mubr.f32.gmra.mrb[10].mxu0 %v292_v16  ;;  %606 = vmatmul.mubr.f32.gmra.mrb[10].mxu1 %v4091_v17 }
  0xc2   : > { %467 = vmatprep.mubr.f32.mxu0 %v3790_v0  ;;  %611 = vmatprep.mubr.f32.mxu1 %v3790_v0 }
  0xc3   : > { %3033 = vmatpush3.bf16.msra.mxu1 %v3030_v13 }
  0xc4   : > { %3035 = vmatprep.subr.bf16.mxu1 %v3034_v18 }
  0xc5   : > { %468 = vmatmul.mubr.f32.gmra.mrb[12].mxu0 %v293_v21  ;;  %612 = vmatmul.mubr.f32.gmra.mrb[12].mxu1 %v4098_v22 }
  0xc6   : > { %473 = vmatprep.mubr.f32.mxu0 %v3790_v0  ;;  %617 = vmatprep.mubr.f32.mxu1 %v3790_v0 }
  0xc7   : > { %3037 = vmatpush3.bf16.msra.mxu1 %v3034_v18  ;;  %v849_v18 = vld [vmem:[#allocation8] sm:$0xff] }
  0xc8   : > { %3039 = vmatprep.subr.bf16.mxu1 %v3038_v23 }
  0xc9   : > { %474 = vmatmul.mubr.f32.gmra.mrb[14].mxu0 %v294_v24  ;;  %618 = vmatmul.mubr.f32.gmra.mrb[14].mxu1 %v4105_v25 }
  0xca   : > { %479 = vmatprep.mubr.f32.mxu0 %v3790_v0  ;;  %2690 = vmatprep.mubr.f32.mxu1 %v4046_v54 }
  0xcb   : > { %3041 = vmatpush3.bf16.msra.mxu1 %v3038_v23 }
  0xcd   : > { %480 = vmatmul.mubr.f32.gmra.mrb[16].mxu0 %v295_v26 }
  0xce   : > { %485 = vmatprep.mubr.f32.mxu0 %v3790_v0  ;;  %2691 = vmatmul.mubr.f32.vlgmr.msra.gmra.mrb[16].mxu1 %v4055_v59 }
  0xcf   : > { %2693 = vmatprep.mubr.f32.mxu1 %v4065_v1 }
  0xd1   : > { %486 = vmatmul.mubr.f32.gmra.mrb[18].mxu0 %v296_v27 }
  0xd2   : > { %491 = vmatprep.mubr.f32.mxu0 %v3790_v0  ;;  %2694 = vmatmul.mubr.f32.gmra.mrb[18].mxu1 %v290_v6 }
  0xd3   : > { %2696 = vmatprep.mubr.f32.mxu1 %v291_v11 }
  0xd5   : > { %492 = vmatmul.mubr.f32.gmra.mrb[20].mxu0 %v297_v28 }
  0xd6   : > { %497 = vmatprep.mubr.f32.mxu0 %v3790_v0  ;;  %2697 = vmatmul.mubr.f32.gmra.mrb[20].mxu1 %v292_v16 }
  0xd7   : > { %2699 = vmatprep.mubr.f32.mxu1 %v293_v21  ;;  %v3042_v21 = vpack.c.bf16 %v850_v19, %v849_v18 }
  0xd9   : > { %498 = vmatmul.mubr.f32.gmra.mrb[22].mxu0 %v298_v29  ;;  %3043 = vmatprep.subr.bf16.mxu1 %v3042_v21 }
  0xda   : > { %503 = vmatprep.mubr.f32.mxu0 %v3790_v0  ;;  %2700 = vmatmul.mubr.f32.gmra.mrb[22].mxu1 %v294_v24  ;;  %v851_v24 = vld [vmem:[#allocation8 + $0x10] sm:$0xff] }
  0xdb   : > { %2702 = vmatprep.mubr.f32.mxu1 %v295_v26  ;;  %3045 = vmatpush3.bf16.msra.mxu1 %v3042_v21  ;;  %v859_v21 = vld [vmem:[#allocation8 + $0x50] sm:$0xff] }
  0xdd   : > { %504 = vmatmul.mubr.f32.gmra.mrb[24].mxu0 %v299_v30 }
  0xde   : > { %509 = vmatprep.mubr.f32.mxu0 %v3790_v0  ;;  %2703 = vmatmul.mubr.f32.gmra.mrb[24].mxu1 %v296_v27 }
  0xdf   : > { %2705 = vmatprep.mubr.f32.mxu1 %v297_v28 }
  0xe1   : > { %510 = vmatmul.mubr.f32.gmra.mrb[26].mxu0 %v300_v31 }
  0xe2   : > { %515 = vmatprep.mubr.f32.mxu0 %v3790_v0  ;;  %2706 = vmatmul.mubr.f32.gmra.mrb[26].mxu1 %v298_v29 }
  0xe3   : > { %2708 = vmatprep.mubr.f32.mxu1 %v299_v30  ;;  %v853_v30 = vld [vmem:[#allocation8 + $0x20] sm:$0xff] }
  0xe5   : > { %516 = vmatmul.mubr.f32.gmra.mrb[28].mxu0 %v301_v32 }
  0xe6   : > { %521 = vmatprep.mubr.f32.mxu0 %v3790_v0  ;;  %2709 = vmatmul.mubr.f32.gmra.mrb[28].mxu1 %v300_v31  ;;  %v854_v31 = vld [vmem:[#allocation8 + $0x28] sm:$0xff] }
  0xe7   : > { %2711 = vmatprep.mubr.f32.mxu1 %v301_v32 }
  0xe9   : > { %522 = vmatmul.mubr.f32.gmra.mrb[30].mxu0 %v302_v33 }
  0xea   : > { %527 = vmatprep.mubr.f32.mxu0 %v3790_v0  ;;  %2712 = vmatmul.mubr.f32.gmra.mrb[30].mxu1 %v302_v33  ;;  %v3050_v33 = vpack.c.bf16 %v854_v31, %v853_v30  ;;  %v861_v31 = vld [vmem:[#allocation8 + $0x60] sm:$0xff] }
  0xeb   : > { %2714 = vmatprep.mubr.f32.mxu1 %v303_v34 }
  0xed   : > { %528 = vmatmul.mubr.f32.gmra.mrb[32].mxu0 %v303_v34 }
  0xee   : > { %533 = vmatprep.mubr.f32.mxu0 %v3790_v0  ;;  %2715 = vmatmul.mubr.f32.gmra.mrb[32].mxu1 %v304_v35 }
  0xef   : > { %2717 = vmatprep.mubr.f32.mxu1 %v305_v36 }
  0xf1   : > { %534 = vmatmul.mubr.f32.gmra.mrb[34].mxu0 %v304_v35 }
  0xf2   : > { %539 = vmatprep.mubr.f32.mxu0 %v3790_v0  ;;  %2718 = vmatmul.mubr.f32.gmra.mrb[34].mxu1 %v306_v37 }
  0xf3   : > { %2720 = vmatprep.mubr.f32.mxu1 %v307_v38 }
  0xf5   : > { %540 = vmatmul.mubr.f32.gmra.mrb[36].mxu0 %v305_v36  ;;  %v855_v36 = vld [vmem:[#allocation8 + $0x30] sm:$0xff] }
  0xf6   : > { %545 = vmatprep.mubr.f32.mxu0 %v3790_v0  ;;  %2721 = vmatmul.mubr.f32.gmra.mrb[36].mxu1 %v308_v39 }
  0xf7   : > { %2723 = vmatprep.mubr.f32.mxu1 %v309_v40 }
  0xf9   : > { %546 = vmatmul.mubr.f32.gmra.mrb[38].mxu0 %v306_v37  ;;  %v856_v37 = vld [vmem:[#allocation8 + $0x38] sm:$0xff] }
  0xfa   : > { %551 = vmatprep.mubr.f32.mxu0 %v3790_v0  ;;  %2724 = vmatmul.mubr.f32.gmra.mrb[38].mxu1 %v310_v41 }
  0xfb   : > { %2726 = vmatprep.mubr.f32.mxu1 %v4049_v55 }
  0xfd   : > { %552 = vmatmul.mubr.f32.gmra.mrb[40].mxu0 %v307_v38 }
  0xfe   : > { %557 = vmatprep.mubr.f32.mxu0 %v3790_v0  ;;  %2727 = vmatmul.mubr.f32.gmra.mrb[40].mxu1 %v4059_v60 }
  0xff   : > { %2729 = vmatprep.mubr.f32.mxu1 %v4069_v2 }
 0x101   : > { %558 = vmatmul.mubr.f32.gmra.mrb[42].mxu0 %v308_v39  ;;  %v3054_v39 = vpack.c.bf16 %v856_v37, %v855_v36 }
 0x102   : > { %563 = vmatprep.mubr.f32.mxu0 %v3790_v0  ;;  %2730 = vmatmul.mubr.f32.gmra.mrb[42].mxu1 %v4077_v7 }
 0x103   : > { %2732 = vmatprep.mubr.f32.mxu1 %v4084_v12 }
 0x105   : > { %564 = vmatmul.mubr.f32.gmra.mrb[44].mxu0 %v309_v40 }
 0x106   : > { %569 = vmatprep.mubr.f32.mxu0 %v3790_v0  ;;  %2733 = vmatmul.mubr.f32.gmra.mrb[44].mxu1 %v4091_v17 }
 0x107   : > { %2735 = vmatprep.mubr.f32.mxu1 %v4098_v22 }
 0x109   : > { %570 = vmatmul.mubr.f32.gmra.mrb[46].mxu0 %v310_v41 }
 0x10a   : > { %2736 = vmatmul.mubr.f32.gmra.mrb[46].mxu1 %v4105_v25  ;;  %v852_v25 = vld [vmem:[#allocation8 + $0x18] sm:$0xff] }
 0x10b   : > { %v3046_v27 = vpack.c.bf16 %v852_v25, %v851_v24 }
 0x10d   : > { %3047 = vmatprep.subr.bf16.mxu1 %v3046_v27 }
 0x10e   : > { %3049 = vmatpush3.bf16.msra.mxu1 %v3046_v27 }
 0x10f   : > { %3051 = vmatprep.subr.bf16.mxu1 %v3050_v33 }
 0x112   : > { %3053 = vmatpush3.bf16.msra.mxu1 %v3050_v33 }
 0x113   : > { %3055 = vmatprep.subr.bf16.mxu1 %v3054_v39 }
 0x116   : > { %3057 = vmatpush3.bf16.msra.mxu1 %v3054_v39 }
 0x180   : > { %v4151_v42 = vpop.f32.mrb[0].mxu0  ;;  %v4153_v43 = vpop.f32.mrb[0].mxu1 }
 0x181   : > { %5090 = vst [vmem:[#allocation15_spill] sm:$0xff] %v4151_v42  ;;  %5091 = vst [vmem:[#allocation16_spill] sm:$0xff] %v4153_v43  ;;  %865 = vmax.xlane.f32.xlu1 %v4151_v42  ;;  %v4156_v44 = vpop.f32.mrb[1].mxu0  ;;  %v4158_v45 = vpop.f32.mrb[1].mxu1 }
 0x184   : > { %v4160_v46 = vpop.f32.mrb[2].mxu0  ;;  %v4162_v0 = vpop.f32.mrb[2].mxu1 }
 0x185   : > { %5092 = vst [vmem:[#allocation17_spill] sm:$0xff] %v4160_v46  ;;  %5093 = vst [vmem:[#allocation18_spill] sm:$0xff] %v4162_v0  ;;  %867 = vmax.xlane.f32.xlu1 %v4160_v46  ;;  %v4165_v47 = vpop.f32.mrb[3].mxu0  ;;  %v4167_v48 = vpop.f32.mrb[3].mxu1 }
 0x188   : > { %v4169_v49 = vpop.f32.mrb[4].mxu0  ;;  %v4171_v50 = vpop.f32.mrb[4].mxu1 }
 0x189   : > { %5094 = vst [vmem:[#allocation19_spill] sm:$0xff] %v4169_v49  ;;  %869 = vmax.xlane.f32.xlu1 %v4169_v49  ;;  %v4174_v51 = vpop.f32.mrb[5].mxu0  ;;  %v4176_v52 = vpop.f32.mrb[5].mxu1 }
 0x18c   : > { %v4178_v53 = vpop.f32.mrb[6].mxu0  ;;  %v4180_v54 = vpop.f32.mrb[6].mxu1 }
 0x18d   : > { %5095 = vst [vmem:[#allocation20_spill] sm:$0xff] %v4178_v53  ;;  %871 = vmax.xlane.f32.xlu1 %v4178_v53  ;;  %v4183_v55 = vpop.f32.mrb[7].mxu0  ;;  %v4185_v56 = vpop.f32.mrb[7].mxu1 }
 0x190   : > { %v4187_v57 = vpop.f32.mrb[8].mxu0  ;;  %v4189_v58 = vpop.f32.mrb[8].mxu1 }
 0x191   : > { %5096 = vst [vmem:[#allocation21_spill] sm:$0xff] %v4187_v57  ;;  %873 = vmax.xlane.f32.xlu1 %v4187_v57  ;;  %v4192_v59 = vpop.f32.mrb[9].mxu0  ;;  %v4194_v60 = vpop.f32.mrb[9].mxu1 }
 0x192   : > { %v1250_v61 = vmax.f32 %v4156_v44, %v4192_v59 }
 0x194   : > { %v4198_v62 = vpop.f32.mrb[10].mxu0  ;;  %v4200_v63 = vpop.f32.mrb[10].mxu1 }
 0x195   : > { %5097 = vst [vmem:[#allocation22_spill] sm:$0xff] %v4198_v62  ;;  %5098 = vst [vmem:[#allocation23_spill] sm:$0xff] %v4200_v63  ;;  %875 = vmax.xlane.f32.xlu1 %v4198_v62  ;;  %v4203_v1 = vpop.f32.mrb[11].mxu0  ;;  %v4205_v2 = vpop.f32.mrb[11].mxu1 }
 0x196   : > { %v1251_v3 = vmax.f32 %v4165_v47, %v4203_v1 }
 0x198   : > { %v4209_v4 = vpop.f32.mrb[12].mxu0  ;;  %v4211_v5 = vpop.f32.mrb[12].mxu1 }
 0x199   : > { %5099 = vst [vmem:[#allocation24_spill] sm:$0xff] %v4209_v4  ;;  %877 = vmax.xlane.f32.xlu1 %v4209_v4  ;;  %v4214_v6 = vpop.f32.mrb[13].mxu0  ;;  %v4216_v7 = vpop.f32.mrb[13].mxu1 }
 0x19a   : > { %v1252_v8 = vmax.f32 %v4174_v51, %v4214_v6 }
 0x19c   : > { %v4220_v9 = vpop.f32.mrb[14].mxu0  ;;  %v4222_v10 = vpop.f32.mrb[14].mxu1 }
 0x19d   : > { %5100 = vst [vmem:[#allocation25_spill] sm:$0xff] %v4220_v9  ;;  %5101 = vst [vmem:[#allocation26_spill] sm:$0xff] %v4222_v10  ;;  %879 = vmax.xlane.f32.xlu1 %v4220_v9  ;;  %v4225_v11 = vpop.f32.mrb[15].mxu0  ;;  %v4227_v12 = vpop.f32.mrb[15].mxu1 }
 0x19e   : > { %v1253_v13 = vmax.f32 %v4183_v55, %v4225_v11 }
 0x1a0   : > { %v4231_v14 = vpop.f32.mrb[16].mxu0 }
 0x1a1   : > { %5102 = vst [vmem:[#allocation27_spill] sm:$0xff] %v4231_v14  ;;  %881 = vmax.xlane.f32.xlu1 %v4231_v14  ;;  %v4234_v15 = vpop.f32.mrb[17].mxu0  ;;  %v2692_v10 = vpop.f32.mrb[16].mxu1 }
 0x1a2   : > { %v4237_v16 = vmax.f32 %v1250_v61, %v4234_v15  ;;  %v857_v61 = vld [vmem:[#allocation8 + $0x40] sm:$0xff]  ;;  %v690_v63 = vpop.f32.mrb[17].mxu1 }
 0x1a4   : > { %v4239_v17 = vpop.f32.mrb[18].mxu0 }
 0x1a5   : > { %5103 = vst [vmem:[#allocation28_spill] sm:$0xff] %v4239_v17  ;;  %883 = vmax.xlane.f32.xlu1 %v4239_v17  ;;  %v4242_v20 = vpop.f32.mrb[19].mxu0 }
 0x1a6   : > { %v4245_v22 = vmax.f32 %v1251_v3, %v4242_v20  ;;  %v858_v3 = vld [vmem:[#allocation8 + $0x48] sm:$0xff] }
 0x1a8   : > { %v4247_v23 = vpop.f32.mrb[20].mxu0 }
 0x1a9   : > { %5104 = vst [vmem:[#allocation29_spill] sm:$0xff] %v4247_v23  ;;  %885 = vmax.xlane.f32.xlu1 %v4247_v23  ;;  %v4250_v26 = vpop.f32.mrb[21].mxu0 }
 0x1aa   : > { %v4253_v28 = vmax.f32 %v1252_v8, %v4250_v26 }
 0x1ac   : > { %v4255_v29 = vpop.f32.mrb[22].mxu0 }
 0x1ad   : > { %5105 = vst [vmem:[#allocation30_spill] sm:$0xff] %v4255_v29  ;;  %887 = vmax.xlane.f32.xlu1 %v4255_v29  ;;  %v4258_v32 = vpop.f32.mrb[23].mxu0 }
 0x1ae   : > { %v1257_v34 = vmax.f32 %v1253_v13, %v4258_v32  ;;  %v3058_v13 = vpack.c.bf16 %v858_v3, %v857_v61  ;;  %v863_v61 = vld [vmem:[#allocation8 + $0x70] sm:$0xff]  ;;  %v864_v3 = vld [vmem:[#allocation8 + $0x78] sm:$0xff] }
 0x1b0   : > { %v4261_v35 = vpop.f32.mrb[24].mxu0  ;;  %3059 = vmatprep.subr.bf16.mxu1 %v3058_v13 }
 0x1b1   : > { %5106 = vst [vmem:[#allocation31_spill] sm:$0xff] %v4261_v35  ;;  %889 = vmax.xlane.f32.xlu1 %v4261_v35  ;;  %v4264_v38 = vpop.f32.mrb[25].mxu0  ;;  %3061 = vmatpush3.bf16.msra.mxu1 %v3058_v13  ;;  %v3070_v13 = vpack.c.bf16 %v864_v3, %v863_v61 }
 0x1b2   : > { %v1258_v40 = vmax.f32 %v4237_v16, %v4264_v38  ;;  %v860_v16 = vld [vmem:[#allocation8 + $0x58] sm:$0xff] }
 0x1b3   : > { %v3062_v25 = vpack.c.bf16 %v860_v16, %v859_v21 }
 0x1b4   : > { %v4268_v41 = vpop.f32.mrb[26].mxu0 }
 0x1b5   : > { %5107 = vst [vmem:[#allocation32_spill] sm:$0xff] %v4268_v41  ;;  %891 = vmax.xlane.f32.xlu1 %v4268_v41  ;;  %v4271_v8 = vpop.f32.mrb[27].mxu0  ;;  %3063 = vmatprep.subr.bf16.mxu1 %v3062_v25 }
 0x1b6   : > { %v1259_v18 = vmax.f32 %v4245_v22, %v4271_v8  ;;  %3065 = vmatpush3.bf16.msra.mxu1 %v3062_v25  ;;  %v862_v22 = vld [vmem:[#allocation8 + $0x68] sm:$0xff] }
 0x1b7   : > { %v3066_v36 = vpack.c.bf16 %v862_v22, %v861_v31 }
 0x1b8   : > { %v4275_v19 = vpop.f32.mrb[28].mxu0 }
 0x1b9   : > { %5108 = vst [vmem:[#allocation33_spill] sm:$0xff] %v4275_v19  ;;  %893 = vmax.xlane.f32.xlu1 %v4275_v19  ;;  %v4278_v24 = vpop.f32.mrb[29].mxu0  ;;  %3067 = vmatprep.subr.bf16.mxu1 %v3066_v36 }
 0x1ba   : > { %v1260_v27 = vmax.f32 %v4253_v28, %v4278_v24  ;;  %3069 = vmatpush3.bf16.msra.mxu1 %v3066_v36 }
 0x1bb   : > { %3071 = vmatprep.subr.bf16.mxu1 %v3070_v13 }
 0x1bc   : > { %v4282_v30 = vpop.f32.mrb[30].mxu0 }
 0x1bd   : > { %5109 = vst [vmem:[#allocation34_spill] sm:$0xff] %v4282_v30  ;;  %895 = vmax.xlane.f32.xlu1 %v4282_v30  ;;  %v4285_v33 = vpop.f32.mrb[31].mxu0  ;;  %v3076_v30 = vpack.c.bf16 %v2692_v10, %v690_v63 }
 0x1be   : > { %v1261_v37 = vmax.f32 %v1257_v34, %v4285_v33  ;;  %3073 = vmatpush3.bf16.msra.mxu1 %v3070_v13 }
 0x1c0   : > { %v4288_v39 = vpop.f32.mrb[32].mxu0 }
 0x1c1   : > { %5110 = vst [vmem:[#allocation35_spill] sm:$0xff] %v4288_v39  ;;  %v4290_v28 = vpop.f32.mrb[33].mxu0 }
 0x1c2   : > { %v1262_v21 = vmax.f32 %v1258_v40, %v4290_v28 }
 0x1c4   : > { %v4293_v16 = vpop.f32.mrb[34].mxu0 }
 0x1c5   : > { %5111 = vst [vmem:[#allocation36_spill] sm:$0xff] %v4293_v16  ;;  %899 = vmax.xlane.f32.xlu1 %v4293_v16  ;;  %v4296_v25 = vpop.f32.mrb[35].mxu0 }
 0x1c6   : > { %v1263_v34 = vmax.f32 %v1259_v18, %v4296_v25 }
 0x1c8   : > { %v4299_v31 = vpop.f32.mrb[36].mxu0 }
 0x1c9   : > { %5112 = vst [vmem:[#allocation37_spill] sm:$0xff] %v4299_v31  ;;  %901 = vmax.xlane.f32.xlu1 %v4299_v31  ;;  %v4302_v22 = vpop.f32.mrb[37].mxu0 }
 0x1ca   : > { %v1264_v36 = vmax.f32 %v1260_v27, %v4302_v22 }
 0x1cc   : > { %v4305_v61 = vpop.f32.mrb[38].mxu0 }
 0x1cd   : > { %5113 = vst [vmem:[#allocation38_spill] sm:$0xff] %v4305_v61  ;;  %903 = vmax.xlane.f32.xlu1 %v4305_v61  ;;  %v4308_v40 = vpop.f32.mrb[39].mxu0 }
 0x1ce   : > { %v1265_v3 = vmax.f32 %v1261_v37, %v4308_v40 }
 0x1d0   : > { %v4311_v13 = vpop.f32.mrb[40].mxu0 }
 0x1d1   : > { %5114 = vst [vmem:[#allocation39_spill] sm:$0xff] %v4311_v13  ;;  %905 = vmax.xlane.f32.xlu1 %v4311_v13  ;;  %v4314_v18 = vpop.f32.mrb[41].mxu0  ;;  %v2695_v13 = vpop.f32.mrb[18].mxu1 }
 0x1d2   : > { %v1266_v31 = vmax.f32 %v1262_v21, %v4314_v18  ;;  %v700_v19 = vpop.f32.mrb[19].mxu1 }
 0x1d3   : > { %v3080_v35 = vpack.c.bf16 %v2695_v13, %v700_v19  ;;  %v2698_v29 = vpop.f32.mrb[20].mxu1 }
 0x1d4   : > { %v4317_v16 = vpop.f32.mrb[42].mxu0  ;;  %v1270_v27 = vmax.f32 %v1266_v31, %v4158_v45 }
 0x1d5   : > { %5115 = vst [vmem:[#allocation40_spill] sm:$0xff] %v4317_v16  ;;  %907 = vmax.xlane.f32.xlu1 %v4317_v16  ;;  %v4321_v61 = vpop.f32.mrb[43].mxu0  ;;  %v710_v16 = vpop.f32.mrb[21].mxu1 }
 0x1d6   : > { %v1274_v37 = vmax.f32 %v1270_v27, %v4194_v60  ;;  %v1267_v39 = vmax.f32 %v1263_v34, %v4321_v61  ;;  %v3084_v17 = vpack.c.bf16 %v2698_v29, %v710_v16  ;;  %v4333_v34 = vpop.f32.mrb[22].mxu1 }
 0x1d7   : > { %v4335_v63 = vpop.f32.mrb[23].mxu1 }
 0x1d8   : > { %v4325_v41 = vpop.f32.mrb[44].mxu0  ;;  %v1271_v21 = vmax.f32 %v1267_v39, %v4167_v48  ;;  %v4342_v13 = vpop.f32.mrb[24].mxu1 }
 0x1d9   : > { %5116 = vst [vmem:[#allocation41_spill] sm:$0xff] %v4325_v41  ;;  %909 = vmax.xlane.f32.xlu1 %v4325_v41  ;;  %v4329_v31 = vpop.f32.mrb[45].mxu0 }
 0x1da   : > { %v1275_v23 = vmax.f32 %v1271_v21, %v4205_v2  ;;  %v1268_v27 = vmax.f32 %v1264_v36, %v4329_v31  ;;  %v4347_v36 = vpop.f32.mrb[25].mxu1 }
 0x1dc   : > { %v1278_v10 = vmax.f32 %v1274_v37, %v1275_v23  ;;  %v4337_v14 = vpop.f32.mrb[46].mxu0  ;;  %v1272_v19 = vmax.f32 %v1268_v27, %v4176_v52  ;;  %v4353_v37 = vpop.f32.mrb[26].mxu1 }
 0x1dd   : > { %5117 = vst [vmem:[#allocation42_spill] sm:$0xff] %v4337_v14  ;;  %911 = vmax.xlane.f32.xlu1 %v4337_v14  ;;  %v4345_v21 = vpop.f32.mrb[47].mxu0  ;;  %v4355_v27 = vpop.f32.mrb[27].mxu1 }
 0x1de   : > { %v1276_v29 = vmax.f32 %v1272_v19, %v4216_v7  ;;  %v1269_v16 = vmax.f32 %v1265_v3, %v4345_v21  ;;  %v4360_v41 = vpop.f32.mrb[28].mxu1 }
 0x1df   : > { %v4363_v9 = vpop.f32.mrb[29].mxu1 }
 0x1e0   : > { %v1273_v39 = vmax.f32 %v1269_v16, %v4185_v56  ;;  %5118 = vst [vmem:[#allocation43_spill] sm:$0xff] %v4363_v9  ;;  %v4368_v23 = vpop.f32.mrb[30].mxu1 }
 0x1e1   : > { %913 = vmax.xlane.f32.xlu1 %v4153_v43  ;;  %v4370_v4 = vpop.f32.mrb[31].mxu1 }
 0x1e2   : > { %v1277_v3 = vmax.f32 %v1273_v39, %v4227_v12  ;;  %v2716_v14 = vpop.f32.mrb[32].mxu1 }
 0x1e3   : > { %v770_v57 = vpop.f32.mrb[33].mxu1 }
 0x1e4   : > { %v1279_v62 = vmax.f32 %v1276_v29, %v1277_v3  ;;  %v3074_v53 = vpack.c.bf16 %v2716_v14, %v770_v57  ;;  %v2719_v49 = vpop.f32.mrb[34].mxu1 }
 0x1e5   : > { %915 = vmax.xlane.f32.xlu1 %v4162_v0  ;;  %v780_v39 = vpop.f32.mrb[35].mxu1 }
 0x1e6   : > { %v1280_v43 = vmax.f32 %v1278_v10, %v1279_v62  ;;  %3075 = vmatprep.subr.bf16.mxu0 %v3074_v53  ;;  %v3078_v19 = vpack.c.bf16 %v2719_v49, %v780_v39  ;;  %v2722_v9 = vpop.f32.mrb[36].mxu1 }
 0x1e7   : > { %3077 = vmatpush3.bf16.msra.mxu0 %v3076_v30  ;;  %v790_v3 = vpop.f32.mrb[37].mxu1 }
 0x1e8   : > { %v1281_v46 = vrot.slane %v1280_v43, 4  ;;  %3079 = vmatprep.subr.bf16.mxu0 %v3078_v19  ;;  %v3082_v16 = vpack.c.bf16 %v2722_v9, %v790_v3  ;;  %v2725_v62 = vpop.f32.mrb[38].mxu1 }
 0x1e9   : > { %917 = vmax.xlane.f32.xlu1 %v4171_v50  ;;  %v800_v14 = vpop.f32.mrb[39].mxu1 }
 0x1ea   : > { %v1282_v42 = vmax.f32 %v1280_v43, %v1281_v46  ;;  %v3086_v53 = vpack.c.bf16 %v2725_v62, %v800_v14  ;;  %v2728_v43 = vpop.f32.mrb[40].mxu1  ;;  %v5120_v62 = vpack.c.bf16 %v4342_v13, %v4347_v36 }
 0x1eb   : > { %3081 = vmatpush3.bf16.msra.mxu0 %v3080_v35  ;;  %v810_v30 = vpop.f32.mrb[41].mxu1 }
 0x1ec   : > { %v1283_v29 = vrot.slane %v1282_v42, 2  ;;  %3083 = vmatprep.subr.bf16.mxu0 %v3082_v16  ;;  %v2731_v19 = vpop.f32.mrb[42].mxu1  ;;  %v3090_v16 = vpack.c.bf16 %v2728_v43, %v810_v30 }
 0x1ed   : > { %919 = vmax.xlane.f32.xlu1 %v4180_v54 }
 0x1ee   : > { %v1284_v0 = vmax.f32 %v1282_v42, %v1283_v29  ;;  %v820_v29 = vpop.f32.mrb[43].mxu1 }
 0x1ef   : > { %3085 = vmatpush3.bf16.msra.mxu0 %v3084_v17 }
 0x1f0   : > { %v1285_v57 = vrot.slane %v1284_v0, 1  ;;  %3087 = vmatprep.subr.bf16.mxu0 %v3086_v53 }
 0x1f1   : > { %921 = vmax.xlane.f32.xlu1 %v4189_v58 }
 0x1f2   : > { %v4378_v49 = vmax.f32 %v1284_v0, %v1285_v57 }
 0x1f4   : > { %v1287_v46 = vsub.f32 %v4156_v44, %v4378_v49  ;;  %v1288_v9 = vsub.f32 %v4165_v47, %v4378_v49  ;;  %v1289_v42 = vsub.f32 %v4174_v51, %v4378_v49  ;;  %v1290_v35 = vsub.f32 %v4183_v55, %v4378_v49 }
 0x1f5   : > { %v1291_v17 = vsub.f32 %v4192_v59, %v4378_v49  ;;  %v1292_v0 = vsub.f32 %v4203_v1, %v4378_v49  ;;  %v1293_v10 = vsub.f32 %v4214_v6, %v4378_v49  ;;  %v1294_v44 = vsub.f32 %v4225_v11, %v4378_v49  ;;  %925 = vmax.xlane.f32.xlu1 %v4211_v5 }
 0x1f6   : > { %v1295_v47 = vsub.f32 %v4234_v15, %v4378_v49  ;;  %v1296_v51 = vsub.f32 %v4242_v20, %v4378_v49  ;;  %v1297_v55 = vsub.f32 %v4250_v26, %v4378_v49  ;;  %v1298_v59 = vsub.f32 %v4258_v32, %v4378_v49 }
 0x1f7   : > { %v5119_v1 = vpack.c.bf16 %v4333_v34, %v4335_v63  ;;  %v1299_v6 = vsub.f32 %v4264_v38, %v4378_v49  ;;  %v1300_v11 = vsub.f32 %v4271_v8, %v4378_v49  ;;  %v1301_v15 = vsub.f32 %v4278_v24, %v4378_v49  ;;  %v2734_v63 = vpop.f32.mrb[44].mxu1 }
 0x1f8   : > { %v1318_v53 = vsub.f32 %v4227_v12, %v4378_v49  ;;  %v1321_v34 = vmul.f32 1.442695, %v1288_v9  ;;  %v1323_v39 = vmul.f32 1.442695, %v1289_v42  ;;  %v3094_v20 = vpack.c.bf16 %v2731_v19, %v820_v29  ;;  %v830_v9 = vpop.f32.mrb[45].mxu1 }
 0x1f9   : > { %3089 = vmatpush3.bf16.msra.mxu0 %v5119_v1  ;;  %v1319_v1 = vmul.f32 1.442695, %v1287_v46  ;;  %v1325_v3 = vmul.f32 1.442695, %v1290_v35  ;;  %v1327_v14 = vmul.f32 1.442695, %v1291_v17  ;;  %v5121_v46 = vpack.c.bf16 %v4353_v37, %v4355_v27 }
 0x1fa   : > { %3091 = vmatprep.subr.bf16.mxu0 %v3090_v16  ;;  %v1329_v57 = vmul.f32 1.442695, %v1292_v0  ;;  %v1331_v43 = vmul.f32 1.442695, %v1293_v10  ;;  %v1333_v42 = vmul.f32 1.442695, %v1294_v44  ;;  %v3098_v30 = vpack.c.bf16 %v2734_v63, %v830_v9 }
 0x1fb   : > { %3382 = vpow2.f32 %v1319_v1  ;;  %v2737_v35 = vpop.f32.mrb[46].mxu1  ;;  %v1335_v17 = vmul.f32 1.442695, %v1295_v47  ;;  %v5122_v27 = vld [vmem:[#allocation43_spill] sm:$0xff]  ;;  %v1337_v44 = vmul.f32 1.442695, %v1296_v51  ;;  %v5129_v24 = vsub.f32 %v4296_v25, %v4378_v49 }
 0x1fc   : > { %3384 = vpow2.f32 %v1321_v34  ;;  %v840_v13 = vpop.f32.mrb[47].mxu1  ;;  %v5123_v10 = vpack.c.bf16 %v4360_v41, %v5122_v27  ;;  %v1339_v47 = vmul.f32 1.442695, %v1297_v55  ;;  %v5124_v41 = vpack.c.bf16 %v4368_v23, %v4370_v4 }
 0x1fd   : > { %3093 = vmatpush3.bf16.msra.mxu0 %v5120_v62  ;;  %3386 = vpow2.f32 %v1323_v39  ;;  %v3102_v0 = vpack.c.bf16 %v2737_v35, %v840_v13  ;;  %v1341_v51 = vmul.f32 1.442695, %v1298_v59  ;;  %v1343_v26 = vmul.f32 1.442695, %v1299_v6  ;;  %v5130_v13 = vld [vmem:[#allocation19_spill] sm:$0xff] }
 0x1fe   : > { %3095 = vmatprep.subr.bf16.mxu0 %v3094_v20  ;;  %3388 = vpow2.f32 %v1325_v3  ;;  %v1345_v32 = vmul.f32 1.442695, %v1300_v11  ;;  %v1347_v38 = vmul.f32 1.442695, %v1301_v15  ;;  %v5125_v6 = vsub.f32 %v4285_v33, %v4378_v49 }
 0x1ff   : > { %3390 = vpow2.f32 %v1327_v14  ;;  %v5127_v11 = vsub.f32 %v4290_v28, %v4378_v49  ;;  %v1353_v15 = vmul.f32 1.442695, %v5129_v24 }
 0x200   : > { %3392 = vpow2.f32 %v1329_v57  ;;  %v1349_v14 = vmul.f32 1.442695, %v5125_v6 }
 0x201   : > { %3097 = vmatpush3.bf16.msra.mxu0 %v5121_v46  ;;  %3394 = vpow2.f32 %v1331_v43  ;;  %v5126_v46 = vld [vmem:[#allocation15_spill] sm:$0xff] }
 0x202   : > { %3099 = vmatprep.subr.bf16.mxu0 %v3098_v30  ;;  %3396 = vpow2.f32 %v1333_v42  ;;  %v1351_v42 = vmul.f32 1.442695, %v5127_v11  ;;  %v5128_v30 = vld [vmem:[#allocation17_spill] sm:$0xff] }
 0x203   : > { %3398 = vpow2.f32 %v1335_v17 }
 0x204   : > { %3400 = vpow2.f32 %v1337_v44 }
 0x205   : > { %v4454_v19 = vpop.eup %3382  ;;  %3101 = vmatpush3.bf16.msra.mxu0 %v5123_v10  ;;  %3402 = vpow2.f32 %v1339_v47  ;;  %v5132_v47 = vld [vmem:[#allocation20_spill] sm:$0xff] }
 0x206   : > { %v4456_v36 = vpop.eup %3384  ;;  %3103 = vmatprep.subr.bf16.mxu0 %v3102_v0  ;;  %3404 = vpow2.f32 %v1341_v51 }
 0x207   : > { %v1383_v37 = vadd.f32 %v4456_v36, %v4454_v19  ;;  %v4463_v20 = vpop.eup %3386  ;;  %3406 = vpow2.f32 %v1343_v26 }
 0x208   : > { %v4466_v34 = vpop.eup %3388  ;;  %3408 = vpow2.f32 %v1345_v32 }
 0x209   : > { %v1384_v16 = vadd.f32 %v4463_v20, %v1383_v37  ;;  %3105 = vmatpush3.bf16.msra.mxu0 %v5124_v41  ;;  %v4475_v29 = vpop.eup %3390  ;;  %3410 = vpow2.f32 %v1347_v38  ;;  %v5131_v37 = vsub.f32 %v4302_v22, %v4378_v49 }
 0x20a   : > { %v4481_v62 = vpop.eup %3392  ;;  %3412 = vpow2.f32 %v1349_v14 }
 0x20b   : > { %v1385_v63 = vadd.f32 %v4466_v34, %v1384_v16  ;;  %v4487_v23 = vpop.eup %3394  ;;  %v1355_v27 = vmul.f32 1.442695, %v5131_v37  ;;  %3414 = vpow2.f32 %v1351_v42 }
 0x20c   : > { %v4493_v57 = vpop.eup %3396  ;;  %3416 = vpow2.f32 %v1353_v15 }
 0x20d   : > { %v1386_v3 = vadd.f32 %v4475_v29, %v1385_v63  ;;  %v4503_v8 = vpop.eup %3398  ;;  %3418 = vpow2.f32 %v1355_v27  ;;  %v5139_v27 = vsub.f32 %v4345_v21, %v4378_v49 }
 0x20e   : > { %v866_v39 = vpop.xlane.xlu1 %865  ;;  %v4514_v0 = vpop.eup %3400 }
 0x20f   : > { %v1387_v55 = vadd.f32 %v4481_v62, %v1386_v3  ;;  %v929_v43 = vsub.f32 %v5126_v46, %v866_v39  ;;  %v4520_v16 = vpop.eup %3402  ;;  %v5133_v3 = vsub.f32 %v4308_v40, %v4378_v49 }
 0x210   : > { %v4524_v51 = vpop.eup %3404 }
 0x211   : > { %v1388_v59 = vadd.f32 %v4487_v23, %v1387_v55  ;;  %v961_v10 = vmul.f32 1.442695, %v929_v43  ;;  %v1357_v26 = vmul.f32 1.442695, %v5133_v3  ;;  %v4530_v32 = vpop.eup %3406  ;;  %v5136_v43 = vsub.f32 %v4321_v61, %v4378_v49 }
 0x212   : > { %v868_v4 = vpop.xlane.xlu1 %867  ;;  %v4534_v14 = vpop.eup %3408 }
 0x213   : > { %v1389_v1 = vadd.f32 %v4493_v57, %v1388_v59  ;;  %v930_v35 = vsub.f32 %v5128_v30, %v868_v4  ;;  %3420 = vpow2.f32 %v961_v10  ;;  %v5134_v59 = vld [vmem:[#allocation21_spill] sm:$0xff]  ;;  %v4543_v30 = vpop.eup %3410 }
 0x214   : > { %v4546_v15 = vpop.eup %3412 }
 0x215   : > { %v1390_v33 = vadd.f32 %v4503_v8, %v1389_v1  ;;  %v963_v25 = vmul.f32 1.442695, %v930_v35  ;;  %v5135_v1 = vsub.f32 %v4314_v18, %v4378_v49  ;;  %v5137_v35 = vld [vmem:[#allocation22_spill] sm:$0xff] }
 0x216   : > { %v870_v9 = vpop.xlane.xlu1 %869 }
 0x217   : > { %v931_v17 = vsub.f32 %v5130_v13, %v870_v9  ;;  %v1391_v28 = vadd.f32 %v4514_v0, %v1390_v33  ;;  %3422 = vpow2.f32 %v963_v25  ;;  %v1359_v46 = vmul.f32 1.442695, %v5135_v1  ;;  %v4549_v33 = vpop.eup %3414 }
 0x218   : > { %v1361_v9 = vmul.f32 1.442695, %v5136_v43  ;;  %v5138_v13 = vsub.f32 %v4329_v31, %v4378_v49  ;;  %v4554_v37 = vpop.eup %3416 }
 0x219   : > { %v1392_v39 = vadd.f32 %v4520_v16, %v1391_v28  ;;  %v965_v41 = vmul.f32 1.442695, %v931_v17  ;;  %v1365_v28 = vmul.f32 1.442695, %v5139_v27  ;;  %v4560_v25 = vpop.eup %3418 }
 0x21a   : > { %v872_v44 = vpop.xlane.xlu1 %871  ;;  %v1363_v61 = vmul.f32 1.442695, %v5138_v13 }
 0x21b   : > { %v932_v63 = vsub.f32 %v5132_v47, %v872_v44  ;;  %v1393_v55 = vadd.f32 %v4524_v51, %v1392_v39  ;;  %3424 = vpow2.f32 %v965_v41  ;;  %v5140_v47 = vld [vmem:[#allocation24_spill] sm:$0xff] }
 0x21d   : > { %v967_v22 = vmul.f32 1.442695, %v932_v63  ;;  %v1394_v6 = vadd.f32 %v4530_v32, %v1393_v55  ;;  %v4563_v39 = vpop.eup %3420  ;;  %v5142_v55 = vsub.f32 %v4167_v48, %v4378_v49  ;;  %v5144_v48 = vsub.f32 %v4176_v52, %v4378_v49 }
 0x21e   : > { %v874_v4 = vpop.xlane.xlu1 %873  ;;  %2770 = vmatprep.mubr.f32.mxu1 %v4563_v39 }
 0x21f   : > { %v933_v38 = vsub.f32 %v5134_v59, %v874_v4  ;;  %3426 = vpow2.f32 %v967_v22  ;;  %v1395_v11 = vadd.f32 %v4534_v14, %v1394_v6  ;;  %v5141_v22 = vsub.f32 %v4158_v45, %v4378_v49  ;;  %v5143_v45 = vld [vmem:[#allocation25_spill] sm:$0xff] }
 0x220   : > { %3428 = vpow2.f32 %v1357_v26  ;;  %v1369_v4 = vmul.f32 1.442695, %v5142_v55 }
 0x221   : > { %v969_v40 = vmul.f32 1.442695, %v933_v38  ;;  %v1396_v18 = vadd.f32 %v4543_v30, %v1395_v11  ;;  %v4566_v41 = vpop.eup %3422  ;;  %v1367_v21 = vmul.f32 1.442695, %v5141_v22 }
 0x222   : > { %v876_v42 = vpop.xlane.xlu1 %875  ;;  %2771 = vmatmul.mubr.f32.vlgmr.msra.gmra.mrb[48].mxu1 %v4566_v41 }
 0x223   : > { %3430 = vpow2.f32 %v969_v40  ;;  %v934_v24 = vsub.f32 %v5137_v35, %v876_v42  ;;  %v1397_v10 = vadd.f32 %v4546_v15, %v1396_v18  ;;  %v5145_v42 = vsub.f32 %v4185_v56, %v4378_v49 }
 0x224   : > { %3432 = vpow2.f32 %v1359_v46  ;;  %v5147_v56 = vsub.f32 %v4194_v60, %v4378_v49 }
 0x225   : > { %v971_v17 = vmul.f32 1.442695, %v934_v24  ;;  %3434 = vpow2.f32 %v1361_v9  ;;  %v1398_v31 = vadd.f32 %v4549_v33, %v1397_v10  ;;  %v4572_v26 = vpop.eup %3424  ;;  %v1371_v9 = vmul.f32 1.442695, %v5144_v48 }
 0x226   : > { %v878_v44 = vpop.xlane.xlu1 %877  ;;  %2773 = vmatprep.mubr.f32.mxu1 %v4572_v26  ;;  %v1373_v35 = vmul.f32 1.442695, %v5145_v42  ;;  %v1375_v10 = vmul.f32 1.442695, %v5147_v56 }
 0x227   : > { %3436 = vpow2.f32 %v971_v17  ;;  %v935_v63 = vsub.f32 %v5140_v47, %v878_v44  ;;  %v1399_v59 = vadd.f32 %v4554_v37, %v1398_v31  ;;  %v5148_v47 = vsub.f32 %v4205_v2, %v4378_v49 }
 0x228   : > { %3438 = vpow2.f32 %v1363_v61  ;;  %v5146_v61 = vld [vmem:[#allocation27_spill] sm:$0xff]  ;;  %v5150_v2 = vsub.f32 %v4216_v7, %v4378_v49 }
 0x229   : > { %v973_v3 = vmul.f32 1.442695, %v935_v63  ;;  %3440 = vpow2.f32 %v1365_v28  ;;  %v4579_v6 = vpop.eup %3426  ;;  %v1400_v40 = vadd.f32 %v4560_v25, %v1399_v59  ;;  %v1377_v63 = vmul.f32 1.442695, %v5148_v47 }
 0x22a   : > { %v880_v38 = vpop.xlane.xlu1 %879  ;;  %v4583_v46 = vpop.eup %3428  ;;  %2774 = vmatmul.mubr.f32.gmra.mrb[50].mxu1 %v4579_v6 }
 0x22b   : > { %3442 = vpow2.f32 %v973_v3  ;;  %v936_v1 = vsub.f32 %v5143_v45, %v880_v38  ;;  %v1401_v24 = vadd.f32 %v4583_v46, %v1400_v40  ;;  %v5149_v3 = vld [vmem:[#allocation28_spill] sm:$0xff]  ;;  %v1379_v38 = vmul.f32 1.442695, %v5150_v2 }
 0x22c   : > { %3444 = vpow2.f32 %v1367_v21 }
 0x22d   : > { %v4586_v43 = vpop.eup %3430  ;;  %v975_v11 = vmul.f32 1.442695, %v936_v1  ;;  %3446 = vpow2.f32 %v1369_v4  ;;  %v1381_v1 = vmul.f32 1.442695, %v1318_v53 }
 0x22e   : > { %v882_v18 = vpop.xlane.xlu1 %881  ;;  %v4596_v13 = vpop.eup %3432  ;;  %2776 = vmatprep.mubr.f32.mxu1 %v4586_v43 }
 0x22f   : > { %3448 = vpow2.f32 %v975_v11  ;;  %v937_v17 = vsub.f32 %v5146_v61, %v882_v18  ;;  %v4600_v52 = vpop.eup %3434  ;;  %v1402_v27 = vadd.f32 %v4596_v13, %v1401_v24  ;;  %v5151_v11 = vld [vmem:[#allocation29_spill] sm:$0xff]  ;;  %v5152_v61 = vld [vmem:[#allocation30_spill] sm:$0xff] }
 0x230   : > { %3450 = vpow2.f32 %v1371_v9 }
 0x231   : > { %v4603_v28 = vpop.eup %3436  ;;  %v977_v44 = vmul.f32 1.442695, %v937_v17  ;;  %3452 = vpow2.f32 %v1373_v35  ;;  %v1403_v31 = vadd.f32 %v4600_v52, %v1402_v27 }
 0x232   : > { %2777 = vmatmul.mubr.f32.gmra.mrb[52].mxu1 %v4603_v28  ;;  %v884_v22 = vpop.xlane.xlu1 %883  ;;  %v4613_v21 = vpop.eup %3438 }
 0x233   : > { %3454 = vpow2.f32 %v977_v44  ;;  %v938_v55 = vsub.f32 %v5149_v3, %v884_v22  ;;  %v4616_v4 = vpop.eup %3440  ;;  %v1404_v60 = vadd.f32 %v4613_v21, %v1403_v31  ;;  %v5153_v22 = vld [vmem:[#allocation31_spill] sm:$0xff] }
 0x234   : > { %3456 = vpow2.f32 %v1375_v10 }
 0x235   : > { %v4619_v59 = vpop.eup %3442  ;;  %v979_v45 = vmul.f32 1.442695, %v938_v55  ;;  %3458 = vpow2.f32 %v1377_v63  ;;  %v1405_v40 = vadd.f32 %v4616_v4, %v1404_v60 }
 0x236   : > { %2779 = vmatprep.mubr.f32.mxu1 %v4619_v59  ;;  %v886_v48 = vpop.xlane.xlu1 %885  ;;  %v4629_v9 = vpop.eup %3444 }
 0x237   : > { %3460 = vpow2.f32 %v979_v45  ;;  %v939_v42 = vsub.f32 %v5151_v11, %v886_v48  ;;  %v4632_v35 = vpop.eup %3446  ;;  %v1406_v7 = vadd.f32 %v4629_v9, %v1405_v40  ;;  %v5154_v48 = vld [vmem:[#allocation32_spill] sm:$0xff] }
 0x238   : > { %3462 = vpow2.f32 %v1379_v38 }
 0x239   : > { %v4635_v24 = vpop.eup %3448  ;;  %v981_v18 = vmul.f32 1.442695, %v939_v42  ;;  %3464 = vpow2.f32 %v1381_v1  ;;  %v1407_v12 = vadd.f32 %v4632_v35, %v1406_v7 }
 0x23a   : > { %2780 = vmatmul.mubr.f32.gmra.mrb[54].mxu1 %v4635_v24  ;;  %v888_v49 = vpop.xlane.xlu1 %887  ;;  %v4639_v53 = vpop.eup %3450 }
 0x23b   : > { %3466 = vpow2.f32 %v981_v18  ;;  %v940_v17 = vsub.f32 %v5152_v61, %v888_v49  ;;  %v4642_v27 = vpop.eup %3452  ;;  %v1408_v56 = vadd.f32 %v4639_v53, %v1407_v12 }
 0x23d   : > { %v4645_v10 = vpop.eup %3454  ;;  %v983_v44 = vmul.f32 1.442695, %v940_v17  ;;  %v1409_v47 = vadd.f32 %v4642_v27, %v1408_v56  ;;  %v5155_v17 = vld [vmem:[#allocation33_spill] sm:$0xff] }
 0x23e   : > { %2782 = vmatprep.mubr.f32.mxu1 %v4645_v10  ;;  %v890_v63 = vpop.xlane.xlu1 %889  ;;  %v4649_v31 = vpop.eup %3456 }
 0x23f   : > { %3468 = vpow2.f32 %v983_v44  ;;  %v941_v3 = vsub.f32 %v5153_v22, %v890_v63  ;;  %v4652_v55 = vpop.eup %3458  ;;  %v1410_v60 = vadd.f32 %v4649_v31, %v1409_v47 }
 0x241   : > { %v4655_v2 = vpop.eup %3460  ;;  %v985_v38 = vmul.f32 1.442695, %v941_v3  ;;  %v1411_v45 = vadd.f32 %v4652_v55, %v1410_v60  ;;  %v5156_v60 = vld [vmem:[#allocation34_spill] sm:$0xff] }
 0x242   : > { %2783 = vmatmul.mubr.f32.gmra.mrb[56].mxu1 %v4655_v2  ;;  %v892_v1 = vpop.xlane.xlu1 %891  ;;  %v4659_v40 = vpop.eup %3462 }
 0x243   : > { %3470 = vpow2.f32 %v985_v38  ;;  %v942_v11 = vsub.f32 %v5154_v48, %v892_v1  ;;  %v4662_v42 = vpop.eup %3464  ;;  %v1412_v7 = vadd.f32 %v4659_v40, %v1411_v45 }
 0x245   : > { %v4665_v18 = vpop.eup %3466  ;;  %v987_v12 = vmul.f32 1.442695, %v942_v11  ;;  %v1413_v49 = vadd.f32 %v4662_v42, %v1412_v7 }
 0x246   : > { %2785 = vmatprep.mubr.f32.mxu1 %v4665_v18  ;;  %v894_v61 = vpop.xlane.xlu1 %893 }
 0x247   : > { %3472 = vpow2.f32 %v987_v12  ;;  %v943_v56 = vsub.f32 %v5155_v17, %v894_v61  ;;  %v1414_v44 = vrot.slane %v1413_v49, 4 }
 0x249   : > { %v4670_v47 = vpop.eup %3468  ;;  %v989_v63 = vmul.f32 1.442695, %v943_v56  ;;  %v1415_v22 = vadd.f32 %v1414_v44, %v1413_v49 }
 0x24a   : > { %2786 = vmatmul.mubr.f32.gmra.mrb[58].mxu1 %v4670_v47  ;;  %v896_v3 = vpop.xlane.xlu1 %895 }
 0x24b   : > { %3474 = vpow2.f32 %v989_v63  ;;  %v944_v38 = vsub.f32 %v5156_v60, %v896_v3  ;;  %v1416_v45 = vrot.slane %v1415_v22, 2 }
 0x24d   : > { %v4674_v1 = vpop.eup %3470  ;;  %v991_v48 = vmul.f32 1.442695, %v944_v38  ;;  %v1417_v11 = vadd.f32 %v1416_v45, %v1415_v22 }
 0x24e   : > { %2788 = vmatprep.mubr.f32.mxu1 %v4674_v1 }
 0x24f   : > { %3476 = vpow2.f32 %v991_v48  ;;  %v1418_v7 = vrot.slane %v1417_v11, 1 }
 0x251   : > { %v4677_v12 = vpop.eup %3472  ;;  %v1419_v61 = vadd.f32 %v1418_v7, %v1417_v11 }
 0x252   : > { %2789 = vmatmul.mubr.f32.gmra.mrb[60].mxu1 %v4677_v12 }
 0x253   : > { %3478 = vrcp.f32 %v1419_v61 }
 0x255   : > { %v4680_v49 = vpop.eup %3474 }
 0x256   : > { %2791 = vmatprep.mubr.f32.mxu1 %v4680_v49 }
 0x259   : > { %v4683_v17 = vpop.eup %3476 }
 0x25a   : > { %5157 = vst [vmem:[#allocation43_spill] sm:$0xff] %v4683_v17  ;;  %2792 = vmatmul.mubr.f32.gmra.mrb[62].mxu1 %v4683_v17 }
 0x25d   : > { %v3479_v56 = vpop.eup %3478 }
 0x25e   : > { %v1421_v44 = vmul.f32 %v3479_v56, %v4454_v19  ;;  %v1437_v63 = vmul.f32 %v3479_v56, %v4549_v33  ;;  %v1422_v22 = vmul.f32 %v3479_v56, %v4456_v36  ;;  %v1438_v3 = vmul.f32 %v3479_v56, %v4554_v37 }
 0x25f   : > { %v1423_v60 = vmul.f32 %v3479_v56, %v4463_v20  ;;  %v1439_v38 = vmul.f32 %v3479_v56, %v4560_v25  ;;  %v1424_v48 = vmul.f32 %v3479_v56, %v4466_v34  ;;  %v1440_v11 = vmul.f32 %v3479_v56, %v4583_v46 }
 0x260   : > { %v3270_v45 = vpack.i.bf16 %v1421_v44, %v1437_v63  ;;  %v3272_v7 = vpack.i.bf16 %v1422_v22, %v1438_v3  ;;  %v1425_v17 = vmul.f32 %v3479_v56, %v4475_v29  ;;  %v1441_v19 = vmul.f32 %v3479_v56, %v4596_v13 }
 0x261   : > { %v3274_v61 = vpack.i.bf16 %v1423_v60, %v1439_v38  ;;  %v3276_v33 = vpack.i.bf16 %v1424_v48, %v1440_v11  ;;  %v1426_v36 = vmul.f32 %v3479_v56, %v4481_v62  ;;  %v1442_v20 = vmul.f32 %v3479_v56, %v4600_v52 }
 0x262   : > { %3271 = vxpose.xlu0.b32.start [1/16] %v3270_v45, 128  ;;  %v3278_v37 = vpack.i.bf16 %v1425_v17, %v1441_v19  ;;  %v1427_v25 = vmul.f32 %v3479_v56, %v4487_v23  ;;  %v1443_v44 = vmul.f32 %v3479_v56, %v4613_v21  ;;  %v1428_v34 = vmul.f32 %v3479_v56, %v4493_v57 }
 0x263   : > { %v1444_v46 = vmul.f32 %v3479_v56, %v4616_v4  ;;  %v1429_v63 = vmul.f32 %v3479_v56, %v4503_v8  ;;  %v3280_v29 = vpack.i.bf16 %v1426_v36, %v1442_v20  ;;  %v1445_v13 = vmul.f32 %v3479_v56, %v4629_v9 }
 0x264   : > { %v3282_v22 = vpack.i.bf16 %v1427_v25, %v1443_v44  ;;  %v1430_v3 = vmul.f32 %v3479_v56, %v4514_v0  ;;  %v1446_v52 = vmul.f32 %v3479_v56, %v4632_v35  ;;  %v1431_v23 = vmul.f32 %v3479_v56, %v4520_v16 }
 0x265   : > { %v3284_v62 = vpack.i.bf16 %v1428_v34, %v1444_v46  ;;  %v3286_v17 = vpack.i.bf16 %v1429_v63, %v1445_v13  ;;  %v1447_v21 = vmul.f32 %v3479_v56, %v4639_v53  ;;  %v1432_v57 = vmul.f32 %v3479_v56, %v4524_v51 }
 0x266   : > { %3273 = vxpose.xlu0.b32.cont [2/16] %v3272_v7, 128  ;;  %v3288_v4 = vpack.i.bf16 %v1430_v3, %v1446_v52  ;;  %v1448_v8 = vmul.f32 %v3479_v56, %v4642_v27  ;;  %v1433_v60 = vmul.f32 %v3479_v56, %v4530_v32  ;;  %v1449_v9 = vmul.f32 %v3479_v56, %v4649_v31 }
 0x267   : > { %v3290_v38 = vpack.i.bf16 %v1431_v23, %v1447_v21  ;;  %v1434_v0 = vmul.f32 %v3479_v56, %v4534_v14  ;;  %v1450_v45 = vmul.f32 %v3479_v56, %v4652_v55  ;;  %v1435_v16 = vmul.f32 %v3479_v56, %v4543_v30  ;;  %v5158_v14 = vld [vmem:[#allocation35_spill] sm:$0xff] }
 0x268   : > { %v3292_v35 = vpack.i.bf16 %v1432_v57, %v1448_v8  ;;  %v3294_v48 = vpack.i.bf16 %v1433_v60, %v1449_v9  ;;  %v1451_v51 = vmul.f32 %v3479_v56, %v4659_v40  ;;  %v1436_v11 = vmul.f32 %v3479_v56, %v4546_v15  ;;  %v5159_v30 = vld [vmem:[#allocation23_spill] sm:$0xff]  ;;  %v5160_v15 = vld [vmem:[#allocation26_spill] sm:$0xff] }
 0x269   : > { %v3296_v53 = vpack.i.bf16 %v1434_v0, %v1450_v45  ;;  %v1452_v27 = vmul.f32 %v3479_v56, %v4662_v42 }
 0x26a   : > { %3275 = vxpose.xlu0.b32.cont [3/16] %v3274_v61, 128  ;;  %v3298_v32 = vpack.i.bf16 %v1435_v16, %v1451_v51 }
 0x26b   : > { %v3300_v7 = vpack.i.bf16 %v1436_v11, %v1452_v27 }
 0x26e   : > { %3277 = vxpose.xlu0.b32.cont [4/16] %v3276_v33, 128 }
 0x272   : > { %3279 = vxpose.xlu0.b32.cont [5/16] %v3278_v37, 128 }
 0x276   : > { %3281 = vxpose.xlu0.b32.cont [6/16] %v3280_v29, 128 }
 0x27a   : > { %3283 = vxpose.xlu0.b32.cont [7/16] %v3282_v22, 128 }
 0x27e   : > { %3285 = vxpose.xlu0.b32.cont [8/16] %v3284_v62, 128 }
 0x282   : > { %3287 = vxpose.xlu0.b32.cont [9/16] %v3286_v17, 128 }
 0x286   : > { %3289 = vxpose.xlu0.b32.cont [10/16] %v3288_v4, 128 }
 0x28a   : > { %3291 = vxpose.xlu0.b32.cont [11/16] %v3290_v38, 128 }
 0x28e   : > { %3293 = vxpose.xlu0.b32.cont [12/16] %v3292_v35, 128 }
 0x292   : > { %3295 = vxpose.xlu0.b32.cont [13/16] %v3294_v48, 128 }
 0x296   : > { %3297 = vxpose.xlu0.b32.cont [14/16] %v3296_v53, 128 }
 0x29a   : > { %3299 = vxpose.xlu0.b32.cont [15/16] %v3298_v32, 128 }
 0x29e   : > { %3301 = vxpose.xlu0.b32.end [16/16] %v3300_v7, 128 }
 0x2cb   : > { %897 = vmax.xlane.f32.xlu0 %v5158_v14 }
 0x2cf   : > { %923 = vmax.xlane.f32.xlu0 %v5159_v30 }
 0x2d3   : > { %927 = vmax.xlane.f32.xlu0 %v5160_v15 }
 0x2e2   : > { %v3302_v31 = vpop.trf.xlu0 }
 0x2e3   : > { %v3306_v55 = vunpack.i.h.bf16 %v3302_v31  ;;  %v3303_v40 = vunpack.i.l.bf16 %v3302_v31 }
 0x2e5   : > { %1581 = vmatprep.mubr.f32.mxu0 %v3303_v40 }
 0x2e6   : > { %v3307_v42 = vpop.trf.xlu0  ;;  %1582 = vmatmul.mubr.f32.vlgmr.msra.gmra.mrb[48].mxu0 %v3306_v55 }
 0x2e7   : > { %v3308_v56 = vunpack.i.l.bf16 %v3307_v42  ;;  %v3311_v61 = vunpack.i.h.bf16 %v3307_v42 }
 0x2e9   : > { %1586 = vmatprep.mubr.f32.mxu0 %v3308_v56 }
 0x2ea   : > { %v3312_v19 = vpop.trf.xlu0  ;;  %1587 = vmatmul.mubr.f32.gmra.mrb[50].mxu0 %v3311_v61 }
 0x2eb   : > { %v3313_v33 = vunpack.i.l.bf16 %v3312_v19  ;;  %v3316_v36 = vunpack.i.h.bf16 %v3312_v19 }
 0x2ed   : > { %1591 = vmatprep.mubr.f32.mxu0 %v3313_v33 }
 0x2ee   : > { %v3317_v37 = vpop.trf.xlu0  ;;  %1592 = vmatmul.mubr.f32.gmra.mrb[52].mxu0 %v3316_v36 }
 0x2ef   : > { %v3318_v20 = vunpack.i.l.bf16 %v3317_v37  ;;  %v3321_v25 = vunpack.i.h.bf16 %v3317_v37 }
 0x2f1   : > { %1596 = vmatprep.mubr.f32.mxu0 %v3318_v20 }
 0x2f2   : > { %v3322_v44 = vpop.trf.xlu0  ;;  %1597 = vmatmul.mubr.f32.gmra.mrb[54].mxu0 %v3321_v25 }
 0x2f3   : > { %v3323_v34 = vunpack.i.l.bf16 %v3322_v44  ;;  %v3326_v46 = vunpack.i.h.bf16 %v3322_v44 }
 0x2f5   : > { %1601 = vmatprep.mubr.f32.mxu0 %v3323_v34  ;;  %v4721_v52 = vpop.f32.mrb[48].mxu1 }
 0x2f6   : > { %v3327_v63 = vpop.trf.xlu0  ;;  %1602 = vmatmul.mubr.f32.gmra.mrb[56].mxu0 %v3326_v46  ;;  %v4723_v17 = vpop.f32.mrb[49].mxu1 }
 0x2f7   : > { %v3328_v29 = vunpack.i.l.bf16 %v3327_v63  ;;  %v3331_v22 = vunpack.i.h.bf16 %v3327_v63 }
 0x2f9   : > { %1606 = vmatprep.mubr.f32.mxu0 %v3328_v29 }
 0x2fa   : > { %v3332_v13 = vpop.trf.xlu0  ;;  %1607 = vmatmul.mubr.f32.gmra.mrb[58].mxu0 %v3331_v22 }
 0x2fb   : > { %v3333_v3 = vunpack.i.l.bf16 %v3332_v13  ;;  %v3336_v62 = vunpack.i.h.bf16 %v3332_v13  ;;  %v900_v13 = vpop.xlane.xlu1 %899 }
 0x2fd   : > { %1611 = vmatprep.mubr.f32.mxu0 %v3333_v3  ;;  %v4725_v4 = vpop.f32.mrb[50].mxu1 }
 0x2fe   : > { %v3337_v23 = vpop.trf.xlu0  ;;  %1612 = vmatmul.mubr.f32.gmra.mrb[60].mxu0 %v3336_v62  ;;  %v4727_v8 = vpop.f32.mrb[51].mxu1 }
 0x2ff   : > { %v3338_v21 = vunpack.i.l.bf16 %v3337_v23  ;;  %v3341_v57 = vunpack.i.h.bf16 %v3337_v23  ;;  %v902_v23 = vpop.xlane.xlu1 %901 }
 0x301   : > { %1616 = vmatprep.mubr.f32.mxu0 %v3338_v21 }
 0x302   : > { %v3342_v60 = vpop.trf.xlu0  ;;  %1617 = vmatmul.mubr.f32.gmra.mrb[62].mxu0 %v3341_v57 }
 0x303   : > { %v3343_v38 = vunpack.i.l.bf16 %v3342_v60  ;;  %v3346_v9 = vunpack.i.h.bf16 %v3342_v60  ;;  %v904_v60 = vpop.xlane.xlu1 %903 }
 0x305   : > { %v4729_v0 = vpop.f32.mrb[52].mxu1  ;;  %1621 = vmatprep.mubr.f32.mxu0 %v3343_v38 }
 0x306   : > { %v4731_v45 = vpop.f32.mrb[53].mxu1  ;;  %v3347_v35 = vpop.trf.xlu0  ;;  %1622 = vmatmul.mubr.f32.gmra.mrb[64].mxu0 %v3346_v9 }
 0x307   : > { %v3348_v16 = vunpack.i.l.bf16 %v3347_v35  ;;  %v3351_v48 = vunpack.i.h.bf16 %v3347_v35  ;;  %v906_v38 = vpop.xlane.xlu1 %905 }
 0x309   : > { %1626 = vmatprep.mubr.f32.mxu0 %v3348_v16 }
 0x30a   : > { %v3352_v53 = vpop.trf.xlu0  ;;  %1627 = vmatmul.mubr.f32.gmra.mrb[66].mxu0 %v3351_v48 }
 0x30b   : > { %v3353_v51 = vunpack.i.l.bf16 %v3352_v53  ;;  %v3356_v11 = vunpack.i.h.bf16 %v3352_v53  ;;  %v908_v9 = vpop.xlane.xlu1 %907 }
 0x30d   : > { %v4733_v27 = vpop.f32.mrb[54].mxu1  ;;  %1631 = vmatprep.mubr.f32.mxu0 %v3353_v51  ;;  %v5166_v51 = vld [vmem:[#allocation36_spill] sm:$0xff] }
 0x30e   : > { %v4735_v32 = vpop.f32.mrb[55].mxu1  ;;  %v3357_v7 = vpop.trf.xlu0  ;;  %1632 = vmatmul.mubr.f32.gmra.mrb[68].mxu0 %v3356_v11  ;;  %v946_v11 = vsub.f32 %v5166_v51, %v900_v13  ;;  %v5171_v51 = vld [vmem:[#allocation41_spill] sm:$0xff] }
 0x30f   : > { %v3358_v31 = vunpack.i.l.bf16 %v3357_v7  ;;  %v3361_v55 = vunpack.i.h.bf16 %v3357_v7  ;;  %v910_v35 = vpop.xlane.xlu1 %909  ;;  %v5167_v7 = vld [vmem:[#allocation37_spill] sm:$0xff] }
 0x311   : > { %1636 = vmatprep.mubr.f32.mxu0 %v3358_v31  ;;  %v947_v31 = vsub.f32 %v5167_v7, %v902_v23  ;;  %v951_v23 = vsub.f32 %v5171_v51, %v910_v35 }
 0x312   : > { %v3362_v40 = vpop.trf.xlu0  ;;  %1637 = vmatmul.mubr.f32.gmra.mrb[70].mxu0 %v3361_v55 }
 0x313   : > { %v3363_v42 = vunpack.i.l.bf16 %v3362_v40  ;;  %v3366_v56 = vunpack.i.h.bf16 %v3362_v40  ;;  %v912_v16 = vpop.xlane.xlu1 %911 }
 0x315   : > { %v4737_v61 = vpop.f32.mrb[56].mxu1  ;;  %1641 = vmatprep.mubr.f32.mxu0 %v3363_v42  ;;  %v995_v42 = vmul.f32 1.442695, %v946_v11  ;;  %v5172_v11 = vld [vmem:[#allocation42_spill] sm:$0xff] }
 0x316   : > { %v4739_v19 = vpop.f32.mrb[57].mxu1  ;;  %v3367_v33 = vpop.trf.xlu0  ;;  %1642 = vmatmul.mubr.f32.gmra.mrb[72].mxu0 %v3366_v56  ;;  %v5168_v56 = vld [vmem:[#allocation38_spill] sm:$0xff] }
 0x317   : > { %v3368_v36 = vunpack.i.l.bf16 %v3367_v33  ;;  %v3371_v37 = vunpack.i.h.bf16 %v3367_v33  ;;  %v914_v48 = vpop.xlane.xlu1 %913  ;;  %v948_v33 = vsub.f32 %v5168_v56, %v904_v60  ;;  %v1005_v60 = vmul.f32 1.442695, %v951_v23 }
 0x319   : > { %1646 = vmatprep.mubr.f32.mxu0 %v3368_v36 }
 0x31a   : > { %v3372_v20 = vpop.trf.xlu0  ;;  %1647 = vmatmul.mubr.f32.gmra.mrb[74].mxu0 %v3371_v37  ;;  %v997_v37 = vmul.f32 1.442695, %v947_v31  ;;  %v5173_v31 = vld [vmem:[#allocation16_spill] sm:$0xff] }
 0x31b   : > { %v3373_v25 = vunpack.i.l.bf16 %v3372_v20  ;;  %v3376_v44 = vunpack.i.h.bf16 %v3372_v20  ;;  %v916_v53 = vpop.xlane.xlu1 %915  ;;  %v5169_v20 = vld [vmem:[#allocation39_spill] sm:$0xff]  ;;  %v953_v56 = vsub.f32 %v5173_v31, %v914_v48 }
 0x31d   : > { %v4741_v34 = vpop.f32.mrb[58].mxu1  ;;  %1651 = vmatprep.mubr.f32.mxu0 %v3373_v25  ;;  %v949_v25 = vsub.f32 %v5169_v20, %v906_v38 }
 0x31e   : > { %v4743_v46 = vpop.f32.mrb[59].mxu1  ;;  %v3377_v63 = vpop.trf.xlu0  ;;  %1652 = vmatmul.mubr.f32.gmra.mrb[76].mxu0 %v3376_v44 }
 0x31f   : > { %5161 = vst [vmem:[#allocation15_spill] sm:$0xff] %v4743_v46  ;;  %v3378_v29 = vunpack.i.l.bf16 %v3377_v63  ;;  %v3381_v22 = vunpack.i.h.bf16 %v3377_v63  ;;  %v918_v36 = vpop.xlane.xlu1 %917  ;;  %v999_v63 = vmul.f32 1.442695, %v948_v33  ;;  %v1001_v13 = vmul.f32 1.442695, %v949_v25  ;;  %v1976_v46 = vld [vmem:[#allocation7 + $0x48] sm:$0xff] }
 0x320   : > { %v955_v35 = vsub.f32 %v4171_v50, %v918_v36 }
 0x321   : > { %1656 = vmatprep.mubr.f32.mxu0 %v3378_v29  ;;  %v5170_v29 = vld [vmem:[#allocation40_spill] sm:$0xff] }
 0x322   : > { %1657 = vmatmul.mubr.f32.gmra.mrb[78].mxu0 %v3381_v22  ;;  %v950_v22 = vsub.f32 %v5170_v29, %v908_v9  ;;  %v1009_v9 = vmul.f32 1.442695, %v953_v56 }
 0x323   : > { %v920_v7 = vpop.xlane.xlu1 %919 }
 0x325   : > { %v4745_v3 = vpop.f32.mrb[60].mxu1 }
 0x326   : > { %5162 = vst [vmem:[#allocation17_spill] sm:$0xff] %v4745_v3  ;;  %v4747_v62 = vpop.f32.mrb[61].mxu1  ;;  %v1970_v3 = vld [vmem:[#allocation7 + $0x18] sm:$0xff] }
 0x327   : > { %5163 = vst [vmem:[#allocation19_spill] sm:$0xff] %v4747_v62  ;;  %v922_v33 = vpop.xlane.xlu1 %921 }
 0x32b   : > { %v926_v36 = vpop.xlane.xlu1 %925 }
 0x32c   : > { %v959_v51 = vsub.f32 %v4211_v5, %v926_v36 }
 0x32d   : > { %v4749_v21 = vpop.f32.mrb[62].mxu1 }
 0x32e   : > { %5164 = vst [vmem:[#allocation20_spill] sm:$0xff] %v4749_v21  ;;  %v4751_v57 = vpop.f32.mrb[63].mxu1  ;;  %v3579_v21 = vld [vmem:[#allocation8 + $0x18] sm:$0xff] }
 0x32f   : > { %5165 = vst [vmem:[#allocation21_spill] sm:$0xff] %v4751_v57 }
 0x358   : > { %v898_v55 = vpop.xlane.xlu0 %897 }
 0x359   : > { %v945_v40 = vsub.f32 %v5158_v14, %v898_v55  ;;  %v1003_v14 = vmul.f32 1.442695, %v950_v22  ;;  %v952_v55 = vsub.f32 %v5172_v11, %v912_v16 }
 0x35b   : > { %v993_v44 = vmul.f32 1.442695, %v945_v40  ;;  %v1007_v38 = vmul.f32 1.442695, %v952_v55  ;;  %v5174_v40 = vld [vmem:[#allocation18_spill] sm:$0xff] }
 0x35c   : > { %v924_v25 = vpop.xlane.xlu0 %923 }
 0x35d   : > { %3480 = vpow2.f32 %v993_v44  ;;  %v1013_v44 = vmul.f32 1.442695, %v955_v35 }
 0x35e   : > { %3482 = vpow2.f32 %v995_v42  ;;  %v954_v42 = vsub.f32 %v5174_v40, %v916_v53  ;;  %v956_v53 = vsub.f32 %v4180_v54, %v920_v7 }
 0x35f   : > { %3484 = vpow2.f32 %v997_v37 }
 0x360   : > { %3486 = vpow2.f32 %v999_v63  ;;  %v1011_v48 = vmul.f32 1.442695, %v954_v42  ;;  %v957_v63 = vsub.f32 %v4189_v58, %v922_v33  ;;  %v1015_v22 = vmul.f32 1.442695, %v956_v53  ;;  %v928_v23 = vpop.xlane.xlu0 %927 }
 0x361   : > { %3488 = vpow2.f32 %v1001_v13  ;;  %v958_v13 = vsub.f32 %v5159_v30, %v924_v25  ;;  %v960_v11 = vsub.f32 %v5160_v15, %v928_v23  ;;  %v1021_v30 = vmul.f32 1.442695, %v959_v51 }
 0x362   : > { %3490 = vpow2.f32 %v1003_v14  ;;  %v1017_v54 = vmul.f32 1.442695, %v957_v63  ;;  %v3576_v63 = vld [vmem:[#allocation8] sm:$0xff] }
 0x363   : > { %3492 = vpow2.f32 %v1005_v60  ;;  %v1019_v14 = vmul.f32 1.442695, %v958_v13  ;;  %v1023_v5 = vmul.f32 1.442695, %v960_v11 }
 0x364   : > { %3494 = vpow2.f32 %v1007_v38 }
 0x365   : > { %3496 = vpow2.f32 %v1009_v9 }
 0x366   : > { %3498 = vpow2.f32 %v1011_v48 }
 0x367   : > { %v4763_v20 = vpop.eup %3480  ;;  %3500 = vpow2.f32 %v1013_v44 }
 0x368   : > { %v4766_v37 = vpop.eup %3482  ;;  %2794 = vmatprep.mubr.f32.mxu1 %v4763_v20  ;;  %3502 = vpow2.f32 %v1015_v22  ;;  %v3577_v22 = vld [vmem:[#allocation8 + $0x8] sm:$0xff] }
 0x369   : > { %v4769_v16 = vpop.eup %3484  ;;  %2795 = vmatmul.mubr.f32.gmra.mrb[64].mxu1 %v4766_v37  ;;  %3504 = vpow2.f32 %v1017_v54 }
 0x36a   : > { %2797 = vmatprep.mubr.f32.mxu1 %v4769_v16  ;;  %v4775_v50 = vpop.eup %3486  ;;  %3506 = vpow2.f32 %v1019_v14 }
 0x36b   : > { %v4777_v29 = vpop.eup %3488  ;;  %3508 = vpow2.f32 %v1021_v30 }
 0x36c   : > { %v4783_v7 = vpop.eup %3490  ;;  %3510 = vpow2.f32 %v1023_v5 }
 0x36d   : > { %2798 = vmatmul.mubr.f32.gmra.mrb[66].mxu1 %v4775_v50  ;;  %v4785_v58 = vpop.eup %3492  ;;  %3512 = vrcp.f32 %v4721_v52 }
 0x36e   : > { %2800 = vmatprep.mubr.f32.mxu1 %v4777_v29  ;;  %v4790_v55 = vpop.eup %3494  ;;  %3514 = vrcp.f32 %v4723_v17 }
 0x36f   : > { %v4792_v60 = vpop.eup %3496  ;;  %3516 = vrcp.f32 %v4725_v4 }
 0x370   : > { %v4796_v31 = vpop.eup %3498  ;;  %3518 = vrcp.f32 %v4727_v8 }
 0x371   : > { %2801 = vmatmul.mubr.f32.gmra.mrb[68].mxu1 %v4783_v7  ;;  %v4798_v56 = vpop.eup %3500  ;;  %3520 = vrcp.f32 %v4729_v0 }
 0x372   : > { %2803 = vmatprep.mubr.f32.mxu1 %v4785_v58  ;;  %v4802_v15 = vpop.eup %3502  ;;  %3522 = vrcp.f32 %v4731_v45 }
 0x373   : > { %v4804_v38 = vpop.eup %3504  ;;  %3524 = vrcp.f32 %v4733_v27 }
 0x374   : > { %v4808_v40 = vpop.eup %3506  ;;  %3526 = vrcp.f32 %v4735_v32 }
 0x375   : > { %2804 = vmatmul.mubr.f32.gmra.mrb[70].mxu1 %v4790_v55  ;;  %v4810_v42 = vpop.eup %3508  ;;  %3528 = vrcp.f32 %v4737_v61 }
 0x376   : > { %2806 = vmatprep.mubr.f32.mxu1 %v4792_v60  ;;  %v4814_v33 = vpop.eup %3510  ;;  %3530 = vrcp.f32 %v4739_v19  ;;  %v5177_v19 = vld [vmem:[#allocation17_spill] sm:$0xff] }
 0x377   : > { %3532 = vrcp.f32 %v4741_v34 }
 0x379   : > { %2807 = vmatmul.mubr.f32.gmra.mrb[72].mxu1 %v4796_v31 }
 0x37a   : > { %2809 = vmatprep.mubr.f32.mxu1 %v4798_v56 }
 0x37d   : > { %2810 = vmatmul.mubr.f32.gmra.mrb[74].mxu1 %v4802_v15 }
 0x37e   : > { %2812 = vmatprep.mubr.f32.mxu1 %v4804_v38 }
 0x381   : > { %2813 = vmatmul.mubr.f32.gmra.mrb[76].mxu1 %v4808_v40 }
 0x382   : > { %2815 = vmatprep.mubr.f32.mxu1 %v4810_v42 }
 0x385   : > { %2816 = vmatmul.mubr.f32.gmra.mrb[78].mxu1 %v4814_v33 }
 0x386   : > { %2850 = vmatprep.mubr.f32.mxu1 %v4563_v39  ;;  %v3578_v39 = vld [vmem:[#allocation8 + $0x10] sm:$0xff] }
 0x3b9   : > { %v2514_v9 = vpop.f32.mrb[48].mxu0 }
 0x3ba   : > { %v2515_v35 = vpop.f32.mrb[49].mxu0 }
 0x3bb   : > { %v2516_v25 = vadd.f32 %v2515_v35, %v2514_v9 }
 0x3bd   : > { %v2517_v48 = vpop.f32.mrb[50].mxu0  ;;  %v1662_v36 = vmul.f32 %v3576_v63, %v2516_v25 }
 0x3be   : > { %v2518_v53 = vpop.f32.mrb[51].mxu0 }
 0x3bf   : > { %v2519_v44 = vadd.f32 %v2518_v53, %v2517_v48 }
 0x3c1   : > { %v1663_v13 = vmul.f32 %v3577_v22, %v2519_v44  ;;  %v2520_v54 = vpop.f32.mrb[52].mxu0  ;;  %v3580_v22 = vld [vmem:[#allocation8 + $0x20] sm:$0xff] }
 0x3c2   : > { %v2521_v51 = vpop.f32.mrb[53].mxu0 }
 0x3c3   : > { %v2522_v23 = vadd.f32 %v2521_v51, %v2520_v54  ;;  %v3106_v14 = vpack.c.bf16 %v1663_v13, %v1662_v36  ;;  %v3581_v13 = vld [vmem:[#allocation8 + $0x28] sm:$0xff] }
 0x3c5   : > { %v2523_v11 = vpop.f32.mrb[54].mxu0  ;;  %3107 = vmatprep.subr.bf16.mxu1 %v3106_v14  ;;  %v1664_v57 = vmul.f32 %v3578_v39, %v2522_v23  ;;  %v3583_v39 = vld [vmem:[#allocation8 + $0x38] sm:$0xff] }
 0x3c6   : > { %v2524_v30 = vpop.f32.mrb[55].mxu0  ;;  %3109 = vmatpush3.bf16.msra.mxu1 %v3106_v14 }
 0x3c7   : > { %v2525_v5 = vadd.f32 %v2524_v30, %v2523_v11 }
 0x3c9   : > { %v1665_v9 = vmul.f32 %v3579_v21, %v2525_v5  ;;  %v2526_v35 = vpop.f32.mrb[56].mxu0 }
 0x3ca   : > { %v2527_v62 = vpop.f32.mrb[57].mxu0 }
 0x3cb   : > { %v2528_v48 = vadd.f32 %v2527_v62, %v2526_v35  ;;  %v3110_v53 = vpack.c.bf16 %v1665_v9, %v1664_v57  ;;  %v3582_v62 = vld [vmem:[#allocation8 + $0x30] sm:$0xff] }
 0x3cd   : > { %v2529_v25 = vpop.f32.mrb[58].mxu0  ;;  %3111 = vmatprep.subr.bf16.mxu1 %v3110_v53  ;;  %v1666_v36 = vmul.f32 %v3580_v22, %v2528_v48  ;;  %v1969_v48 = vld [vmem:[#allocation7 + $0x10] sm:$0xff] }
 0x3ce   : > { %v2530_v44 = vpop.f32.mrb[59].mxu0  ;;  %3113 = vmatpush3.bf16.msra.mxu1 %v3110_v53 }
 0x3cf   : > { %v2531_v63 = vadd.f32 %v2530_v44, %v2529_v25  ;;  %v1967_v25 = vld [vmem:[#allocation7] sm:$0xff]  ;;  %v1968_v44 = vld [vmem:[#allocation7 + $0x8] sm:$0xff] }
 0x3d1   : > { %v1667_v54 = vmul.f32 %v3581_v13, %v2531_v63  ;;  %v2532_v51 = vpop.f32.mrb[60].mxu0  ;;  %v3138_v13 = vpack.c.bf16 %v1968_v44, %v1967_v25 }
 0x3d2   : > { %v2533_v14 = vpop.f32.mrb[61].mxu0 }
 0x3d3   : > { %v2534_v11 = vadd.f32 %v2533_v14, %v2532_v51  ;;  %v3114_v30 = vpack.c.bf16 %v1667_v54, %v1666_v36  ;;  %v3142_v51 = vpack.c.bf16 %v1970_v3, %v1969_v48  ;;  %v1971_v36 = vld [vmem:[#allocation7 + $0x20] sm:$0xff]  ;;  %v1972_v54 = vld [vmem:[#allocation7 + $0x28] sm:$0xff]  ;;  %3139 = vmatprep.subr.bf16.mxu0 %v3138_v13 }
 0x3d4   : > { %3141 = vmatpush3.bf16.msra.mxu0 %v3138_v13  ;;  %v1975_v48 = vld [vmem:[#allocation7 + $0x40] sm:$0xff] }
 0x3d5   : > { %v2535_v23 = vpop.f32.mrb[62].mxu0  ;;  %3115 = vmatprep.subr.bf16.mxu1 %v3114_v30  ;;  %v1668_v57 = vmul.f32 %v3582_v62, %v2534_v11  ;;  %3143 = vmatprep.subr.bf16.mxu0 %v3142_v51  ;;  %v3584_v62 = vld [vmem:[#allocation8 + $0x40] sm:$0xff] }
 0x3d6   : > { %v2536_v21 = vpop.f32.mrb[63].mxu0  ;;  %3117 = vmatpush3.bf16.msra.mxu1 %v3114_v30 }
 0x3d7   : > { %v2537_v5 = vadd.f32 %v2536_v21, %v2535_v23  ;;  %v3146_v23 = vpack.c.bf16 %v1972_v54, %v1971_v36  ;;  %v1973_v21 = vld [vmem:[#allocation7 + $0x30] sm:$0xff]  ;;  %v3154_v54 = vpack.c.bf16 %v1976_v46, %v1975_v48 }
 0x3d8   : > { %3145 = vmatpush3.bf16.msra.mxu0 %v3142_v51 }
 0x3d9   : > { %v1669_v9 = vmul.f32 %v3583_v39, %v2537_v5  ;;  %v2538_v35 = vpop.f32.mrb[64].mxu0  ;;  %v1974_v5 = vld [vmem:[#allocation7 + $0x38] sm:$0xff]  ;;  %3147 = vmatprep.subr.bf16.mxu0 %v3146_v23 }
 0x3da   : > { %v2539_v53 = vpop.f32.mrb[65].mxu0  ;;  %v3150_v44 = vpack.c.bf16 %v1974_v5, %v1973_v21 }
 0x3db   : > { %v2540_v22 = vadd.f32 %v2539_v53, %v2538_v35  ;;  %v3118_v63 = vpack.c.bf16 %v1669_v9, %v1668_v57  ;;  %v3585_v35 = vld [vmem:[#allocation8 + $0x48] sm:$0xff] }
 0x3dc   : > { %3149 = vmatpush3.bf16.msra.mxu0 %v3146_v23 }
 0x3dd   : > { %v2541_v14 = vpop.f32.mrb[66].mxu0  ;;  %3119 = vmatprep.subr.bf16.mxu1 %v3118_v63  ;;  %v1670_v39 = vmul.f32 %v3584_v62, %v2540_v22  ;;  %3151 = vmatprep.subr.bf16.mxu0 %v3150_v44  ;;  %v1977_v22 = vld [vmem:[#allocation7 + $0x50] sm:$0xff]  ;;  %v3587_v62 = vld [vmem:[#allocation8 + $0x58] sm:$0xff] }
 0x3de   : > { %v2542_v30 = vpop.f32.mrb[67].mxu0  ;;  %3121 = vmatpush3.bf16.msra.mxu1 %v3118_v63 }
 0x3df   : > { %v2543_v11 = vadd.f32 %v2542_v30, %v2541_v14  ;;  %v1978_v14 = vld [vmem:[#allocation7 + $0x58] sm:$0xff]  ;;  %v3586_v30 = vld [vmem:[#allocation8 + $0x50] sm:$0xff] }
 0x3e0   : > { %3153 = vmatpush3.bf16.msra.mxu0 %v3150_v44 }
 0x3e1   : > { %v1671_v57 = vmul.f32 %v3585_v35, %v2543_v11  ;;  %v2544_v9 = vpop.f32.mrb[68].mxu0  ;;  %3155 = vmatprep.subr.bf16.mxu0 %v3154_v54 }
 0x3e2   : > { %v2545_v53 = vpop.f32.mrb[69].mxu0 }
 0x3e3   : > { %v2546_v3 = vadd.f32 %v2545_v53, %v2544_v9  ;;  %v3122_v25 = vpack.c.bf16 %v1671_v57, %v1670_v39  ;;  %v3158_v57 = vpack.c.bf16 %v1978_v14, %v1977_v22  ;;  %v1979_v9 = vld [vmem:[#allocation7 + $0x60] sm:$0xff]  ;;  %v1980_v53 = vld [vmem:[#allocation7 + $0x68] sm:$0xff] }
 0x3e4   : > { %3157 = vmatpush3.bf16.msra.mxu0 %v3154_v54  ;;  %v3162_v48 = vpack.c.bf16 %v1980_v53, %v1979_v9  ;;  %v3590_v54 = vld [vmem:[#allocation8 + $0x70] sm:$0xff] }
 0x3e5   : > { %v2547_v63 = vpop.f32.mrb[70].mxu0  ;;  %3123 = vmatprep.subr.bf16.mxu1 %v3122_v25  ;;  %v1672_v11 = vmul.f32 %v3586_v30, %v2546_v3  ;;  %3159 = vmatprep.subr.bf16.mxu0 %v3158_v57  ;;  %v3588_v3 = vld [vmem:[#allocation8 + $0x60] sm:$0xff] }
 0x3e6   : > { %v2548_v13 = vpop.f32.mrb[71].mxu0  ;;  %3125 = vmatpush3.bf16.msra.mxu1 %v3122_v25 }
 0x3e7   : > { %v2549_v36 = vadd.f32 %v2548_v13, %v2547_v63  ;;  %v3589_v13 = vld [vmem:[#allocation8 + $0x68] sm:$0xff] }
 0x3e8   : > { %3161 = vmatpush3.bf16.msra.mxu0 %v3158_v57 }
 0x3e9   : > { %v1673_v51 = vmul.f32 %v3587_v62, %v2549_v36  ;;  %v2550_v35 = vpop.f32.mrb[72].mxu0  ;;  %3163 = vmatprep.subr.bf16.mxu0 %v3162_v48 }
 0x3ea   : > { %v2551_v39 = vpop.f32.mrb[73].mxu0 }
 0x3eb   : > { %v2552_v21 = vadd.f32 %v2551_v39, %v2550_v35  ;;  %v3126_v5 = vpack.c.bf16 %v1673_v51, %v1672_v11  ;;  %v3591_v39 = vld [vmem:[#allocation8 + $0x78] sm:$0xff] }
 0x3ec   : > { %3165 = vmatpush3.bf16.msra.mxu0 %v3162_v48  ;;  %v5178_v48 = vld [vmem:[#allocation19_spill] sm:$0xff] }
 0x3ed   : > { %v2553_v25 = vpop.f32.mrb[74].mxu0  ;;  %3127 = vmatprep.subr.bf16.mxu1 %v3126_v5  ;;  %v1674_v63 = vmul.f32 %v3588_v3, %v2552_v21  ;;  %v5176_v21 = vld [vmem:[#allocation15_spill] sm:$0xff] }
 0x3ee   : > { %v2554_v23 = vpop.f32.mrb[75].mxu0  ;;  %3129 = vmatpush3.bf16.msra.mxu1 %v3126_v5  ;;  %3534 = vrcp.f32 %v5176_v21 }
 0x3ef   : > { %v2555_v46 = vadd.f32 %v2554_v23, %v2553_v25  ;;  %3536 = vrcp.f32 %v5177_v19 }
 0x3f0   : > { %3538 = vrcp.f32 %v5178_v48 }
 0x3f1   : > { %v1675_v36 = vmul.f32 %v3589_v13, %v2555_v46  ;;  %v2556_v30 = vpop.f32.mrb[76].mxu0 }
 0x3f2   : > { %v2557_v44 = vpop.f32.mrb[77].mxu0 }
 0x3f3   : > { %v2558_v11 = vadd.f32 %v2557_v44, %v2556_v30  ;;  %v3130_v62 = vpack.c.bf16 %v1675_v36, %v1674_v63  ;;  %v5179_v30 = vld [vmem:[#allocation20_spill] sm:$0xff] }
 0x3f4   : > { %3540 = vrcp.f32 %v5179_v30 }
 0x3f5   : > { %v2559_v22 = vpop.f32.mrb[78].mxu0  ;;  %3131 = vmatprep.subr.bf16.mxu1 %v3130_v62  ;;  %v1676_v35 = vmul.f32 %v3590_v54, %v2558_v11  ;;  %v5180_v11 = vld [vmem:[#allocation21_spill] sm:$0xff] }
 0x3f6   : > { %v2560_v14 = vpop.f32.mrb[79].mxu0  ;;  %3133 = vmatpush3.bf16.msra.mxu1 %v3130_v62  ;;  %3542 = vrcp.f32 %v5180_v11 }
 0x3f7   : > { %v2561_v51 = vadd.f32 %v2560_v14, %v2559_v22 }
 0x3f9   : > { %v1677_v5 = vmul.f32 %v3591_v39, %v2561_v51 }
 0x3fb   : > { %v3134_v9 = vpack.c.bf16 %v1677_v5, %v1676_v35 }
 0x3fd   : > { %3135 = vmatprep.subr.bf16.mxu1 %v3134_v9 }
 0x3fe   : > { %3137 = vmatpush3.bf16.msra.mxu1 %v3134_v9 }
 0x401   : > { %2851 = vmatmul.mubr.f32.vlgmr.msra.gmra.mrb[80].mxu1 %v4566_v41  ;;  %v5175_v41 = vld [vmem:[#allocation43_spill] sm:$0xff] }
 0x402   : > { %2853 = vmatprep.mubr.f32.mxu1 %v4572_v26 }
 0x405   : > { %2854 = vmatmul.mubr.f32.gmra.mrb[82].mxu1 %v4579_v6 }
 0x406   : > { %2856 = vmatprep.mubr.f32.mxu1 %v4586_v43 }
 0x409   : > { %2857 = vmatmul.mubr.f32.gmra.mrb[84].mxu1 %v4603_v28 }
 0x40a   : > { %2859 = vmatprep.mubr.f32.mxu1 %v4619_v59 }
 0x40d   : > { %2860 = vmatmul.mubr.f32.gmra.mrb[86].mxu1 %v4635_v24 }
 0x40e   : > { %2862 = vmatprep.mubr.f32.mxu1 %v4645_v10 }
 0x411   : > { %2863 = vmatmul.mubr.f32.gmra.mrb[88].mxu1 %v4655_v2 }
 0x412   : > { %2865 = vmatprep.mubr.f32.mxu1 %v4665_v18 }
 0x415   : > { %2866 = vmatmul.mubr.f32.gmra.mrb[90].mxu1 %v4670_v47 }
 0x416   : > { %2868 = vmatprep.mubr.f32.mxu1 %v4674_v1 }
 0x419   : > { %2869 = vmatmul.mubr.f32.gmra.mrb[92].mxu1 %v4677_v12 }
 0x41a   : > { %2871 = vmatprep.mubr.f32.mxu1 %v4680_v49 }
 0x41d   : > { %2872 = vmatmul.mubr.f32.gmra.mrb[94].mxu1 %v5175_v41 }
 0x41e   : > { %2874 = vmatprep.mubr.f32.mxu1 %v4763_v20 }
 0x421   : > { %2875 = vmatmul.mubr.f32.gmra.mrb[96].mxu1 %v4766_v37  ;;  %v1981_v37 = vld [vmem:[#allocation7 + $0x70] sm:$0xff] }
 0x422   : > { %2877 = vmatprep.mubr.f32.mxu1 %v4769_v16  ;;  %v1982_v16 = vld [vmem:[#allocation7 + $0x78] sm:$0xff] }
 0x425   : > { %2878 = vmatmul.mubr.f32.gmra.mrb[98].mxu1 %v4775_v50  ;;  %v3166_v50 = vpack.c.bf16 %v1982_v16, %v1981_v37 }
 0x426   : > { %2880 = vmatprep.mubr.f32.mxu1 %v4777_v29 }
 0x427   : > { %3167 = vmatprep.subr.bf16.mxu0 %v3166_v50 }
 0x428   : > { %3169 = vmatpush3.bf16.msra.mxu0 %v3166_v50 }
 0x429   : > { %2881 = vmatmul.mubr.f32.gmra.mrb[100].mxu1 %v4783_v7 }
 0x42a   : > { %2883 = vmatprep.mubr.f32.mxu1 %v4785_v58  ;;  %v3513_v58 = vpop.eup %3512 }
 0x42d   : > { %2884 = vmatmul.mubr.f32.gmra.mrb[102].mxu1 %v4790_v55 }
 0x42e   : > { %2886 = vmatprep.mubr.f32.mxu1 %v4792_v60  ;;  %v3515_v60 = vpop.eup %3514 }
 0x42f   : > { %v3517_v52 = vpop.eup %3516 }
 0x430   : > { %v3519_v4 = vpop.eup %3518 }
 0x431   : > { %2887 = vmatmul.mubr.f32.gmra.mrb[104].mxu1 %v4796_v31  ;;  %v3521_v45 = vpop.eup %3520 }
 0x432   : > { %2889 = vmatprep.mubr.f32.mxu1 %v4798_v56 }
 0x435   : > { %2890 = vmatmul.mubr.f32.gmra.mrb[106].mxu1 %v4802_v15 }
 0x436   : > { %2892 = vmatprep.mubr.f32.mxu1 %v4804_v38 }
 0x439   : > { %2893 = vmatmul.mubr.f32.gmra.mrb[108].mxu1 %v4808_v40 }
 0x43a   : > { %2895 = vmatprep.mubr.f32.mxu1 %v4810_v42  ;;  %v3523_v42 = vpop.eup %3522 }
 0x43b   : > { %v3525_v57 = vpop.eup %3524 }
 0x43c   : > { %v4848_v26 = vpop.f32.mrb[64].mxu1  ;;  %v3527_v25 = vpop.eup %3526 }
 0x43d   : > { %v4850_v6 = vpop.f32.mrb[65].mxu1  ;;  %2896 = vmatmul.mubr.f32.gmra.mrb[110].mxu1 %v4814_v33  ;;  %v3529_v3 = vpop.eup %3528  ;;  %3544 = vrcp.f32 %v4848_v26 }
 0x43e   : > { %v3531_v13 = vpop.eup %3530  ;;  %3546 = vrcp.f32 %v4850_v6 }
 0x43f   : > { %v3533_v62 = vpop.eup %3532 }
 0x440   : > { %v4853_v43 = vpop.f32.mrb[66].mxu1  ;;  %v3535_v14 = vpop.eup %3534 }
 0x441   : > { %v4855_v28 = vpop.f32.mrb[67].mxu1  ;;  %v3537_v39 = vpop.eup %3536  ;;  %3548 = vrcp.f32 %v4853_v43 }
 0x442   : > { %v3539_v9 = vpop.eup %3538  ;;  %3550 = vrcp.f32 %v4855_v28 }
 0x443   : > { %v3541_v50 = vpop.eup %3540 }
 0x444   : > { %v4857_v59 = vpop.f32.mrb[68].mxu1 }
 0x445   : > { %v4859_v24 = vpop.f32.mrb[69].mxu1  ;;  %3552 = vrcp.f32 %v4857_v59 }
 0x446   : > { %3554 = vrcp.f32 %v4859_v24 }
 0x448   : > { %v4861_v10 = vpop.f32.mrb[70].mxu1 }
 0x449   : > { %v4863_v2 = vpop.f32.mrb[71].mxu1  ;;  %3556 = vrcp.f32 %v4861_v10 }
 0x44a   : > { %3558 = vrcp.f32 %v4863_v2 }
 0x44c   : > { %v4865_v18 = vpop.f32.mrb[72].mxu1 }
 0x44d   : > { %v4867_v47 = vpop.f32.mrb[73].mxu1  ;;  %3560 = vrcp.f32 %v4865_v18 }
 0x44e   : > { %3562 = vrcp.f32 %v4867_v47 }
 0x450   : > { %v4869_v1 = vpop.f32.mrb[74].mxu1 }
 0x451   : > { %v4871_v12 = vpop.f32.mrb[75].mxu1  ;;  %3564 = vrcp.f32 %v4869_v1 }
 0x452   : > { %3566 = vrcp.f32 %v4871_v12 }
 0x454   : > { %v4873_v49 = vpop.f32.mrb[76].mxu1 }
 0x455   : > { %v4875_v20 = vpop.f32.mrb[77].mxu1  ;;  %3568 = vrcp.f32 %v4873_v49 }
 0x456   : > { %3570 = vrcp.f32 %v4875_v20 }
 0x458   : > { %v4877_v29 = vpop.f32.mrb[78].mxu1 }
 0x459   : > { %v4879_v7 = vpop.f32.mrb[79].mxu1  ;;  %3572 = vrcp.f32 %v4877_v29 }
 0x4d4   : > { %v2852_v55 = vpop.f32.mrb[80].mxu1 }
 0x4d5   : > { %v1936_v31 = vmul.f32 %v3513_v58, %v2852_v55  ;;  %v1744_v56 = vpop.f32.mrb[81].mxu1  ;;  %v3543_v55 = vpop.eup %3542  ;;  %3574 = vrcp.f32 %v4879_v7 }
 0x4d6   : > { %v1935_v15 = vmul.f32 %v3515_v60, %v1744_v56 }
 0x4d8   : > { %v2855_v17 = vpop.f32.mrb[82].mxu1  ;;  %2930 = vmatprep.mubr.f32.mxu0 %v1935_v15 }
 0x4d9   : > { %v1938_v38 = vmul.f32 %v3517_v52, %v2855_v17  ;;  %v1754_v8 = vpop.f32.mrb[83].mxu1  ;;  %2931 = vmatmul.mubr.f32.vlgmr.msra.gmra.mrb[80].mxu0 %v1936_v31  ;;  %v3545_v31 = vpop.eup %3544 }
 0x4da   : > { %v1937_v0 = vmul.f32 %v3519_v4, %v1754_v8  ;;  %v3547_v15 = vpop.eup %3546 }
 0x4db   : > { %v3549_v17 = vpop.eup %3548 }
 0x4dc   : > { %v2858_v40 = vpop.f32.mrb[84].mxu1  ;;  %2933 = vmatprep.mubr.f32.mxu0 %v1937_v0 }
 0x4dd   : > { %v1940_v27 = vmul.f32 %v3521_v45, %v2858_v40  ;;  %v1764_v33 = vpop.f32.mrb[85].mxu1  ;;  %2934 = vmatmul.mubr.f32.gmra.mrb[82].mxu0 %v1938_v38  ;;  %v3551_v38 = vpop.eup %3550 }
 0x4de   : > { %v1939_v32 = vmul.f32 %v3523_v42, %v1764_v33  ;;  %v3553_v0 = vpop.eup %3552 }
 0x4df   : > { %v3555_v40 = vpop.eup %3554 }
 0x4e0   : > { %v2861_v53 = vpop.f32.mrb[86].mxu1  ;;  %2936 = vmatprep.mubr.f32.mxu0 %v1939_v32 }
 0x4e1   : > { %v1942_v61 = vmul.f32 %v3525_v57, %v2861_v53  ;;  %v1774_v23 = vpop.f32.mrb[87].mxu1  ;;  %2937 = vmatmul.mubr.f32.gmra.mrb[84].mxu0 %v1940_v27  ;;  %v3557_v27 = vpop.eup %3556 }
 0x4e2   : > { %v1941_v46 = vmul.f32 %v3527_v25, %v1774_v23  ;;  %v3559_v32 = vpop.eup %3558 }
 0x4e3   : > { %v3561_v57 = vpop.eup %3560 }
 0x4e4   : > { %v2864_v63 = vpop.f32.mrb[88].mxu1  ;;  %2939 = vmatprep.mubr.f32.mxu0 %v1941_v46  ;;  %v3563_v25 = vpop.eup %3562 }
 0x4e5   : > { %v1944_v34 = vmul.f32 %v3529_v3, %v2864_v63  ;;  %v1784_v36 = vpop.f32.mrb[89].mxu1  ;;  %2940 = vmatmul.mubr.f32.gmra.mrb[86].mxu0 %v1942_v61  ;;  %v3565_v23 = vpop.eup %3564 }
 0x4e6   : > { %v1943_v44 = vmul.f32 %v3531_v13, %v1784_v36  ;;  %v3567_v46 = vpop.eup %3566 }
 0x4e7   : > { %v3569_v3 = vpop.eup %3568 }
 0x4e8   : > { %v2867_v22 = vpop.f32.mrb[90].mxu1  ;;  %2942 = vmatprep.mubr.f32.mxu0 %v1943_v44  ;;  %v3571_v13 = vpop.eup %3570 }
 0x4e9   : > { %v1946_v51 = vmul.f32 %v3533_v62, %v2867_v22  ;;  %v1794_v54 = vpop.f32.mrb[91].mxu1  ;;  %2943 = vmatmul.mubr.f32.gmra.mrb[88].mxu0 %v1944_v34  ;;  %v3573_v29 = vpop.eup %3572 }
 0x4ea   : > { %v1945_v35 = vmul.f32 %v3535_v14, %v1794_v54  ;;  %v3575_v7 = vpop.eup %3574  ;;  %v4916_v14 = vld [vmem:[%s5040_s3] ss:$0 sm:$0xff] }
 0x4ec   : > { %v2870_v5 = vpop.f32.mrb[92].mxu1  ;;  %2945 = vmatprep.mubr.f32.mxu0 %v1945_v35 }
 0x4ed   : > { %v1948_v41 = vmul.f32 %v3537_v39, %v2870_v5  ;;  %v1804_v37 = vpop.f32.mrb[93].mxu1  ;;  %2946 = vmatmul.mubr.f32.gmra.mrb[90].mxu0 %v1946_v51 }
 0x4ee   : > { %v1947_v16 = vmul.f32 %v3539_v9, %v1804_v37 }
 0x4f0   : > { %v2873_v58 = vpop.f32.mrb[94].mxu1  ;;  %2948 = vmatprep.mubr.f32.mxu0 %v1947_v16 }
 0x4f1   : > { %v1950_v26 = vmul.f32 %v3541_v50, %v2873_v58  ;;  %v1814_v60 = vpop.f32.mrb[95].mxu1  ;;  %2949 = vmatmul.mubr.f32.gmra.mrb[92].mxu0 %v1948_v41 }
 0x4f2   : > { %v1949_v6 = vmul.f32 %v3543_v55, %v1814_v60 }
 0x4f4   : > { %v2876_v56 = vpop.f32.mrb[96].mxu1  ;;  %2951 = vmatprep.mubr.f32.mxu0 %v1949_v6 }
 0x4f5   : > { %v1952_v43 = vmul.f32 %v3545_v31, %v2876_v56  ;;  %v1824_v52 = vpop.f32.mrb[97].mxu1  ;;  %2952 = vmatmul.mubr.f32.gmra.mrb[94].mxu0 %v1950_v26 }
 0x4f6   : > { %v1951_v28 = vmul.f32 %v3547_v15, %v1824_v52 }
 0x4f8   : > { %v2879_v4 = vpop.f32.mrb[98].mxu1  ;;  %2954 = vmatprep.mubr.f32.mxu0 %v1951_v28 }
 0x4f9   : > { %v1954_v59 = vmul.f32 %v3549_v17, %v2879_v4  ;;  %v1834_v8 = vpop.f32.mrb[99].mxu1  ;;  %2955 = vmatmul.mubr.f32.gmra.mrb[96].mxu0 %v1952_v43 }
 0x4fa   : > { %v1953_v24 = vmul.f32 %v3551_v38, %v1834_v8 }
 0x4fc   : > { %v2882_v45 = vpop.f32.mrb[100].mxu1  ;;  %2957 = vmatprep.mubr.f32.mxu0 %v1953_v24 }
 0x4fd   : > { %v1956_v10 = vmul.f32 %v3553_v0, %v2882_v45  ;;  %v1844_v42 = vpop.f32.mrb[101].mxu1  ;;  %2958 = vmatmul.mubr.f32.gmra.mrb[98].mxu0 %v1954_v59 }
 0x4fe   : > { %v1955_v2 = vmul.f32 %v3555_v40, %v1844_v42 }
 0x500   : > { %v2885_v33 = vpop.f32.mrb[102].mxu1  ;;  %2960 = vmatprep.mubr.f32.mxu0 %v1955_v2 }
 0x501   : > { %v1958_v18 = vmul.f32 %v3557_v27, %v2885_v33  ;;  %v1854_v21 = vpop.f32.mrb[103].mxu1  ;;  %2961 = vmatmul.mubr.f32.gmra.mrb[100].mxu0 %v1956_v10 }
 0x502   : > { %v1957_v47 = vmul.f32 %v3559_v32, %v1854_v21 }
 0x504   : > { %v2888_v53 = vpop.f32.mrb[104].mxu1  ;;  %2963 = vmatprep.mubr.f32.mxu0 %v1957_v47 }
 0x505   : > { %v1960_v1 = vmul.f32 %v3561_v57, %v2888_v53  ;;  %v1864_v61 = vpop.f32.mrb[105].mxu1  ;;  %2964 = vmatmul.mubr.f32.gmra.mrb[102].mxu0 %v1958_v18 }
 0x506   : > { %v1959_v12 = vmul.f32 %v3563_v25, %v1864_v61 }
 0x508   : > { %v2891_v19 = vpop.f32.mrb[106].mxu1  ;;  %2966 = vmatprep.mubr.f32.mxu0 %v1959_v12 }
 0x509   : > { %v1962_v49 = vmul.f32 %v3565_v23, %v2891_v19  ;;  %v1874_v48 = vpop.f32.mrb[107].mxu1  ;;  %2967 = vmatmul.mubr.f32.gmra.mrb[104].mxu0 %v1960_v1 }
 0x50a   : > { %v1961_v20 = vmul.f32 %v3567_v46, %v1874_v48 }
 0x50c   : > { %v2894_v63 = vpop.f32.mrb[108].mxu1  ;;  %2969 = vmatprep.mubr.f32.mxu0 %v1961_v20 }
 0x50d   : > { %v1964_v34 = vmul.f32 %v3569_v3, %v2894_v63  ;;  %v1884_v36 = vpop.f32.mrb[109].mxu1  ;;  %2970 = vmatmul.mubr.f32.gmra.mrb[106].mxu0 %v1962_v49 }
 0x50e   : > { %v1963_v30 = vmul.f32 %v3571_v13, %v1884_v36 }
 0x510   : > { %v2897_v44 = vpop.f32.mrb[110].mxu1  ;;  %2972 = vmatprep.mubr.f32.mxu0 %v1963_v30 }
 0x511   : > { %v1966_v11 = vmul.f32 %v3573_v29, %v2897_v44  ;;  %v1894_v62 = vpop.f32.mrb[111].mxu1  ;;  %2973 = vmatmul.mubr.f32.gmra.mrb[108].mxu0 %v1964_v34 }
 0x512   : > { %v1965_v22 = vmul.f32 %v3575_v7, %v1894_v62 }
 0x514   : > { %2975 = vmatprep.mubr.f32.mxu0 %v1965_v22 }
 0x515   : > { %2976 = vmatmul.mubr.f32.gmra.mrb[110].mxu0 %v1966_v11 }
 0x5ac   : > { %v2932_v51 = vpop.f32.mrb[80].mxu0 }
 0x5ad   : > { %v2062_v54 = vadd.f32 %v2932_v51, %v4916_v14  ;;  %v2056_v35 = vpop.f32.mrb[81].mxu0 }
 0x5ae   : > { %v2057_v39 = vadd.f32 %v4916_v14, %v2056_v35 }
 0x5af   : > { %2216 = vst [vmem:[%s4922_s14 + $0x8] sm:$0xff] %v2062_v54 }
 0x5b0   : > { %2215 = vst [vmem:[%s4922_s14] sm:$0xff] %v2057_v39  ;;  %v2935_v5 = vpop.f32.mrb[82].mxu0 }
 0x5b1   : > { %v2072_v9 = vadd.f32 %v2935_v5, %v4916_v14  ;;  %v2066_v41 = vpop.f32.mrb[83].mxu0 }
 0x5b2   : > { %v2067_v37 = vadd.f32 %v4916_v14, %v2066_v41 }
 0x5b3   : > { %2218 = vst [vmem:[%s4922_s14 + $0x18] sm:$0xff] %v2072_v9 }
 0x5b4   : > { %2217 = vst [vmem:[%s4922_s14 + $0x10] sm:$0xff] %v2067_v37  ;;  %v2938_v16 = vpop.f32.mrb[84].mxu0 }
 0x5b5   : > { %v2082_v50 = vadd.f32 %v2938_v16, %v4916_v14  ;;  %v2076_v58 = vpop.f32.mrb[85].mxu0 }
 0x5b6   : > { %v2077_v55 = vadd.f32 %v4916_v14, %v2076_v58 }
 0x5b7   : > { %2220 = vst [vmem:[%s4922_s14 + $0x28] sm:$0xff] %v2082_v50 }
 0x5b8   : > { %2219 = vst [vmem:[%s4922_s14 + $0x20] sm:$0xff] %v2077_v55  ;;  %v2941_v26 = vpop.f32.mrb[86].mxu0 }
 0x5b9   : > { %v2092_v60 = vadd.f32 %v2941_v26, %v4916_v14  ;;  %v2086_v6 = vpop.f32.mrb[87].mxu0 }
 0x5ba   : > { %v2087_v31 = vadd.f32 %v4916_v14, %v2086_v6 }
 0x5bb   : > { %2222 = vst [vmem:[%s4922_s14 + $0x38] sm:$0xff] %v2092_v60 }
 0x5bc   : > { %2221 = vst [vmem:[%s4922_s14 + $0x30] sm:$0xff] %v2087_v31  ;;  %v2944_v56 = vpop.f32.mrb[88].mxu0 }
 0x5bd   : > { %v2102_v15 = vadd.f32 %v2944_v56, %v4916_v14  ;;  %v2096_v43 = vpop.f32.mrb[89].mxu0 }
 0x5be   : > { %v2097_v52 = vadd.f32 %v4916_v14, %v2096_v43 }
 0x5bf   : > { %2224 = vst [vmem:[%s4922_s14 + $0x48] sm:$0xff] %v2102_v15 }
 0x5c0   : > { %2223 = vst [vmem:[%s4922_s14 + $0x40] sm:$0xff] %v2097_v52  ;;  %v2947_v28 = vpop.f32.mrb[90].mxu0 }
 0x5c1   : > { %v2112_v17 = vadd.f32 %v2947_v28, %v4916_v14  ;;  %v2106_v4 = vpop.f32.mrb[91].mxu0 }
 0x5c2   : > { %v2107_v38 = vadd.f32 %v4916_v14, %v2106_v4 }
 0x5c3   : > { %2226 = vst [vmem:[%s4922_s14 + $0x58] sm:$0xff] %v2112_v17 }
 0x5c4   : > { %2225 = vst [vmem:[%s4922_s14 + $0x50] sm:$0xff] %v2107_v38  ;;  %v2950_v59 = vpop.f32.mrb[92].mxu0 }
 0x5c5   : > { %v2122_v8 = vadd.f32 %v2950_v59, %v4916_v14  ;;  %v2116_v24 = vpop.f32.mrb[93].mxu0 }
 0x5c6   : > { %v2117_v0 = vadd.f32 %v4916_v14, %v2116_v24 }
 0x5c7   : > { %2228 = vst [vmem:[%s4922_s14 + $0x68] sm:$0xff] %v2122_v8 }
 0x5c8   : > { %2227 = vst [vmem:[%s4922_s14 + $0x60] sm:$0xff] %v2117_v0  ;;  %v2953_v45 = vpop.f32.mrb[94].mxu0 }
 0x5c9   : > { %v2132_v40 = vadd.f32 %v2953_v45, %v4916_v14  ;;  %v2126_v10 = vpop.f32.mrb[95].mxu0 }
 0x5ca   : > { %v2127_v42 = vadd.f32 %v4916_v14, %v2126_v10 }
 0x5cb   : > { %2230 = vst [vmem:[%s4922_s14 + $0x78] sm:$0xff] %v2132_v40 }
 0x5cc   : > { %2229 = vst [vmem:[%s4922_s14 + $0x70] sm:$0xff] %v2127_v42  ;;  %v2956_v2 = vpop.f32.mrb[96].mxu0 }
 0x5cd   : > { %v2142_v27 = vadd.f32 %v2956_v2, %v4916_v14  ;;  %v2136_v33 = vpop.f32.mrb[97].mxu0 }
 0x5ce   : > { %v2137_v32 = vadd.f32 %v4916_v14, %v2136_v33 }
 0x5cf   : > { %2232 = vst [vmem:[%s4922_s14 + $0x88] sm:$0xff] %v2142_v27 }
 0x5d0   : > { %2231 = vst [vmem:[%s4922_s14 + $0x80] sm:$0xff] %v2137_v32  ;;  %v2959_v18 = vpop.f32.mrb[98].mxu0 }
 0x5d1   : > { %v2152_v21 = vadd.f32 %v2959_v18, %v4916_v14  ;;  %v2146_v47 = vpop.f32.mrb[99].mxu0 }
 0x5d2   : > { %v2147_v57 = vadd.f32 %v4916_v14, %v2146_v47 }
 0x5d3   : > { %2234 = vst [vmem:[%s4922_s14 + $0x98] sm:$0xff] %v2152_v21 }
 0x5d4   : > { %2233 = vst [vmem:[%s4922_s14 + $0x90] sm:$0xff] %v2147_v57  ;;  %v2962_v53 = vpop.f32.mrb[100].mxu0 }
 0x5d5   : > { %v2162_v25 = vadd.f32 %v2962_v53, %v4916_v14  ;;  %v2156_v1 = vpop.f32.mrb[101].mxu0 }
 0x5d6   : > { %v2157_v61 = vadd.f32 %v4916_v14, %v2156_v1 }
 0x5d7   : > { %2236 = vst [vmem:[%s4922_s14 + $0xa8] sm:$0xff] %v2162_v25 }
 0x5d8   : > { %2235 = vst [vmem:[%s4922_s14 + $0xa0] sm:$0xff] %v2157_v61  ;;  %v2965_v12 = vpop.f32.mrb[102].mxu0 }
 0x5d9   : > { %v2172_v23 = vadd.f32 %v2965_v12, %v4916_v14  ;;  %v2166_v19 = vpop.f32.mrb[103].mxu0 }
 0x5da   : > { %v2167_v46 = vadd.f32 %v4916_v14, %v2166_v19 }
 0x5db   : > { %2238 = vst [vmem:[%s4922_s14 + $0xb8] sm:$0xff] %v2172_v23 }
 0x5dc   : > { %2237 = vst [vmem:[%s4922_s14 + $0xb0] sm:$0xff] %v2167_v46  ;;  %v2968_v49 = vpop.f32.mrb[104].mxu0 }
 0x5dd   : > { %v2182_v48 = vadd.f32 %v2968_v49, %v4916_v14  ;;  %v2176_v20 = vpop.f32.mrb[105].mxu0 }
 0x5de   : > { %v2177_v3 = vadd.f32 %v4916_v14, %v2176_v20 }
 0x5df   : > { %2240 = vst [vmem:[%s4922_s14 + $0xc8] sm:$0xff] %v2182_v48 }
 0x5e0   : > { %2239 = vst [vmem:[%s4922_s14 + $0xc0] sm:$0xff] %v2177_v3  ;;  %v2971_v63 = vpop.f32.mrb[106].mxu0 }
 0x5e1   : > { %v2192_v13 = vadd.f32 %v2971_v63, %v4916_v14  ;;  %v2186_v34 = vpop.f32.mrb[107].mxu0 }
 0x5e2   : > { %v2187_v36 = vadd.f32 %v4916_v14, %v2186_v34 }
 0x5e3   : > { %2242 = vst [vmem:[%s4922_s14 + $0xd8] sm:$0xff] %v2192_v13 }
 0x5e4   : > { %2241 = vst [vmem:[%s4922_s14 + $0xd0] sm:$0xff] %v2187_v36  ;;  %v2974_v30 = vpop.f32.mrb[108].mxu0 }
 0x5e5   : > { %v2202_v29 = vadd.f32 %v2974_v30, %v4916_v14  ;;  %v2196_v44 = vpop.f32.mrb[109].mxu0 }
 0x5e6   : > { %v2197_v7 = vadd.f32 %v4916_v14, %v2196_v44 }
 0x5e7   : > { %2244 = vst [vmem:[%s4922_s14 + $0xe8] sm:$0xff] %v2202_v29 }
 0x5e8   : > { %2243 = vst [vmem:[%s4922_s14 + $0xe0] sm:$0xff] %v2197_v7  ;;  %v2977_v11 = vpop.f32.mrb[110].mxu0 }
 0x5e9   : > { %v2212_v62 = vadd.f32 %v2977_v11, %v4916_v14  ;;  %v2206_v22 = vpop.f32.mrb[111].mxu0 }
 0x5ea   : > { %v2207_v51 = vadd.f32 %v4916_v14, %v2206_v22 }
 0x5eb   : > { %2246 = vst [vmem:[%s4922_s14 + $0xf8] sm:$0xff] %v2212_v62 }
 0x5ec   : > { %2245 = vst [vmem:[%s4922_s14 + $0xf0] sm:$0xff] %v2207_v51 }
 0x5ed   : > { %3719 = shalt.err (!%p3716_p4)
}
 0x5ee   : > { %s3720_s10 = scalar_lea.hbm %s4988_s13, 4096  ;;  %s3724_s24 = scalar_lea.hbm %s5042_s5, 8192 }
 0x5ef   : > { %p3721_p9 = scmp.ne.s32.totalorder %s4988_s13, %s3720_s10  ;;  %p3725_p8 = scmp.lt.u32.totalorder %s4988_s13, %s5042_s5 }
 0x5f0   : > { %p3726_p13 = scmp.lt.u32.totalorder %s3724_s24, %s3720_s10  ;;  %p3728_p10 = scmp.lt.u32.totalorder %s3720_s10, %s4988_s13 }
 0x5f1   : > { %p3722_p0 = pnand %p3721_p9, %p3972_p5 }
 0x5f2   : > { %p3727_p6 = por %p3726_p13, %p3725_p8 }
 0x5f3   : > { %p3723_p11 = pneg %p3722_p0 }
 0x5f4   : > { %p3729_p3 = por %p3728_p10, %p3727_p6 }
 0x5f6   : > { %p3730_p7 = pnand %p3729_p3, %p3723_p11 }
 0x5f8   : > { %3733 = shalt.err (!%p3730_p7)
}
 0x5f9   : > { %s3792_s15 = smov 128   ;;  %s3793_s6 = smov 8  }
 0x5fa   : > { %3200 = dma.vmem_to_hbm [thread:$0]  (%p3972_p5), %s4990_s27, 4096, %s4988_s13, %s2248_s22, %s3792_s15, %s3792_s15, %s3793_s6  }
 0x5fb PF: > { %s2276_s17 = sand.u32 1, %s3768_s18   ;;  %p5181_p12 = scmp.ne.s32.totalorder %s5077_s25, 0 }
 0x5fc   : > { %p5182_p2 = scmp.ge.s32.totalorder %s3780_s21, 2  ;;  %s2277_s8 = scalar_lea.sflag [#allocation4], %s2276_s17 }
 0x5fe   : > { %p3217_p1 = pnand %p5182_p2, %p5181_p12 }
 0x600   : > { %3763 = dma.done.wait (!%p3217_p1), %s2277_s8, 4096  }
 0x601   : > { %3765 = vsyncadd (!%p3217_p1), %s2277_s8, 4294963200  ;;  %p20_p4 = scmp.ge.s32.totalorder %s3937_s30, 4   ;;  %s5183_s18 = smov %s3772_s19 }
 0x602   : > { %s5184_s19 = smov %s3776_s20  ;;  %s5185_s20 = smov %s3968_s23 }
 0x603   : > { %s5186_s21 = smov %s3937_s30  ;;  %22 = sbr.rel (!%p20_p4) target bundleno = 7 (0x7), region = 97 }
 0x60a   :  { %2282 = vsyncpa [#allocation3], 1 }
 0x60b   :  { %2284 = vsyncpa [#allocation3 + $0x1], 1 }
 0x60c   :  { %2285 = vsyncpa [#allocation6], 1 }
 0x60d   :  { %2286 = vsyncpa [#allocation9], 1 }
 0x60e   :  { %2287 = vsyncpa [#allocation4], 1 }
 0x60f   :  { %2289 = vsyncpa [#allocation4 + $0x1], 1 }

</bundles_post_ra>
